<compile_context>
chip_gen: v6e
topology: v6e:2x2x1
jax: 0.10.0
libtpu: 0.0.40
codegen_flags: <defaults>
</compile_context>

<pallas_src>
import functools

import jax
import jax.numpy as jnp
from jax.experimental import pallas as pl
from jax.experimental.pallas import tpu as pltpu

# ---------------- model hyperparameters (small, synthetic) ----------------
PATCH = 8
WIDTH = 32          # transformer width (d_model)
HEADS = 4
HEAD_DIM = WIDTH // HEADS
LAYERS = 2
MLP_DIM = 4 * WIDTH
EMBED_DIM = 16      # CLIP output embedding dim
LN_EPS = 1e-5
NEG_INF = -1e30


# ---------------- shared in-kernel helpers ----------------

def _layernorm(x, g, b):
    mean = jnp.mean(x, axis=-1, keepdims=True)
    var = jnp.mean((x - mean) ** 2, axis=-1, keepdims=True)
    return (x - mean) * jax.lax.rsqrt(var + LN_EPS) * g + b


# ---------------- fully fused Pallas kernel ----------------

def _clip_fused_kernel(
        patches_ref, convw_ref, tokb_ref, lnpre_g_ref, lnpre_b_ref,
        mask_ref, hmask_ref,
        ln1g_ref, ln1b_ref, wqkv_ref, bqkv_ref, wout_ref, bout_ref,
        ln2g_ref, ln2b_ref, wfc_ref, bfc_ref, wpj_ref, bpj_ref,
        lnpost_g_ref, lnpost_b_ref, proj_ref,
        o_ref, x_scr,
        *, bt, s_pad, heads, head_dim):
    """grid = (batch_blocks, LAYERS). Residual stream lives in VMEM scratch."""
    layer = pl.program_id(1)
    n_layers = pl.num_programs(1)
    width = heads * head_dim
    m = bt * s_pad                                  # flattened rows per batch block

    # ---- stage 1 (once per batch block): patch-embed + CLS/pos bias + ln_pre ----
    @pl.when(layer == 0)
    def _():
        p2 = patches_ref[...].reshape(m, patches_ref.shape[-1])   # (m, CPP) bf16
        e = jnp.dot(p2, convw_ref[...], preferred_element_type=jnp.float32)
        e = e + tokb_ref[...]                       # CLS emb + pos emb, tiled over Bt (f32)
        x_scr[...] = _layernorm(e, lnpre_g_ref[...], lnpre_b_ref[...])

    x = x_scr[...]                                  # (m, WIDTH) f32 residual stream

    # per-layer params; stacked weights are VMEM-resident, dynamic first-axis index
    w_qkv = wqkv_ref[layer]
    b_qkv = bqkv_ref[layer]
    w_out = wout_ref[layer]
    b_out = bout_ref[layer]
    w_fc = wfc_ref[layer]
    b_fc = bfc_ref[layer]
    w_pj = wpj_ref[layer]
    b_pj = bpj_ref[layer]

    # ---------- attention sub-block (pre-LN) ----------
    h = _layernorm(x, ln1g_ref[layer], ln1b_ref[layer])
    qkv = jnp.dot(h.astype(jnp.bfloat16), w_qkv,
                  preferred_element_type=jnp.float32) + b_qkv     # (m, 3W)
    q = qkv[:, 0:width].astype(jnp.bfloat16)
    k = qkv[:, width:2 * width].astype(jnp.bfloat16)
    v = qkv[:, 2 * width:3 * width].astype(jnp.bfloat16)

    scale = float(head_dim) ** -0.5
    mask_bias = mask_ref[...]                       # (m, m) f32, precomputed (pad + cross-image)
    hmask = hmask_ref[...]                          # (heads, WIDTH) bf16 {0,1} lane masks

    attn = jnp.zeros((m, width), jnp.float32)
    for hd in range(heads):                         # static loop; full-width masked matmuls
        hm = hmask[hd:hd + 1, :]                    # (1, WIDTH)
        s = jax.lax.dot_general(q * hm, k, (((1,), (1,)), ((), ())),
                                preferred_element_type=jnp.float32)   # (m, m)
        s = s * scale + mask_bias
        s = s - jnp.max(s, axis=-1, keepdims=True)
        p = jnp.exp(s)
        p = p / jnp.sum(p, axis=-1, keepdims=True)
        # v*hm zeros all lanes outside head hd, so accumulation == concat of heads
        attn = attn + jnp.dot(p.astype(jnp.bfloat16), v * hm,
                              preferred_element_type=jnp.float32)
    attn = jnp.dot(attn.astype(jnp.bfloat16), w_out,
                   preferred_element_type=jnp.float32) + b_out
    x = x + attn

    # ---------- MLP sub-block (pre-LN, QuickGELU) ----------
    h = _layernorm(x, ln2g_ref[layer], ln2b_ref[layer])
    h1 = jnp.dot(h.astype(jnp.bfloat16), w_fc,
                 preferred_element_type=jnp.float32) + b_fc
    h1 = h1 * jax.nn.sigmoid(1.702 * h1)            # QuickGELU (OpenAI CLIP), f32
    h2 = jnp.dot(h1.astype(jnp.bfloat16), w_pj,
                 preferred_element_type=jnp.float32) + b_pj
    x = x + h2

    x_scr[...] = x

    # ---- stage 3 (once per batch block, last layer): ln_post + CLS projection ----
    @pl.when(layer == n_layers - 1)
    def _():
        cls = x.reshape(bt, s_pad, width)[:, 0, :]  # (bt, WIDTH): CLS row per image
        hcls = _layernorm(cls, lnpost_g_ref[...], lnpost_b_ref[...])
        o_ref[0] = jnp.dot(hcls.astype(jnp.bfloat16), proj_ref[...],
                           preferred_element_type=jnp.float32)        # bias-free


# ---------------- pallas_call wrapper ----------------

def clip_encode_pallas(patches_pad, tok_bias_tiled, mask_bias, head_mask,
                       conv_w, ln_pre_g, ln_pre_b, stacked,
                       ln_post_g, ln_post_b, proj, *, bt):
    bp, s_pad, cpp = patches_pad.shape
    bb = bp // bt
    n_layers = stacked["wqkv"].shape[0]
    m = bt * s_pad

    kern = functools.partial(_clip_fused_kernel, bt=bt, s_pad=s_pad,
                             heads=HEADS, head_dim=HEAD_DIM)

    def const_spec(arr):
        nd = arr.ndim
        return pl.BlockSpec(arr.shape, lambda b, l: (0,) * nd)

    in_specs = [
        pl.BlockSpec((bt, s_pad, cpp), lambda b, l: (b, 0, 0)),   # patches: per batch block
        const_spec(conv_w), const_spec(tok_bias_tiled),
        const_spec(ln_pre_g), const_spec(ln_pre_b),
        const_spec(mask_bias), const_spec(head_mask),
        const_spec(stacked["ln1_g"]), const_spec(stacked["ln1_b"]),
        const_spec(stacked["wqkv"]), const_spec(stacked["bqkv"]),
        const_spec(stacked["wout"]), const_spec(stacked["bout"]),
        const_spec(stacked["ln2_g"]), const_spec(stacked["ln2_b"]),
        const_spec(stacked["wfc"]), const_spec(stacked["bfc"]),
        const_spec(stacked["wproj"]), const_spec(stacked["bproj"]),
        const_spec(ln_post_g), const_spec(ln_post_b), const_spec(proj),
    ]

    out = pl.pallas_call(
        kern,
        out_shape=jax.ShapeDtypeStruct((bb, bt, EMBED_DIM), jnp.float32),
        grid=(bb, n_layers),
        in_specs=in_specs,
        out_specs=pl.BlockSpec((1, bt, EMBED_DIM), lambda b, l: (b, 0, 0)),
        scratch_shapes=[pltpu.VMEM((m, WIDTH), jnp.float32)],
        compiler_params=pltpu.CompilerParams(
            dimension_semantics=("parallel", "arbitrary")),
    )(patches_pad, conv_w, tok_bias_tiled, ln_pre_g, ln_pre_b,
      mask_bias, head_mask,
      stacked["ln1_g"], stacked["ln1_b"], stacked["wqkv"], stacked["bqkv"],
      stacked["wout"], stacked["bout"], stacked["ln2_g"], stacked["ln2_b"],
      stacked["wfc"], stacked["bfc"], stacked["wproj"], stacked["bproj"],
      ln_post_g, ln_post_b, proj)
    return out.reshape(bb * bt, EMBED_DIM)


# ---------------- parameter initialization (deterministic) ----------------

def init_params(key, in_channels, image_size):
    def nrm(k, shape, scale=0.02):
        return (scale * jax.random.normal(k, shape)).astype(jnp.float32)

    gh = image_size // PATCH
    n_patches = gh * gh
    s_real = n_patches + 1

    keys = jax.random.split(key, 8 + LAYERS)
    params = {
        # conv1 weight flattened as (C*p*p, WIDTH), (c,u,v) ordering, bias-free
        "conv1_w": nrm(keys[0], (in_channels * PATCH * PATCH, WIDTH)),
        "class_emb": nrm(keys[1], (WIDTH,)),
        "pos_emb": (0.01 * jax.random.normal(keys[3], (s_real, WIDTH))).astype(jnp.float32),
        "ln_pre_g": jnp.ones((WIDTH,), jnp.float32),
        "ln_pre_b": jnp.zeros((WIDTH,), jnp.float32),
        "ln_post_g": jnp.ones((WIDTH,), jnp.float32),
        "ln_post_b": jnp.zeros((WIDTH,), jnp.float32),
        "proj": nrm(keys[2], (WIDTH, EMBED_DIM)),
        "blocks": [],
    }
    for l in range(LAYERS):
        bk = jax.random.split(keys[8 + l], 6)
        params["blocks"].append({
            "ln1_g": jnp.ones((WIDTH,), jnp.float32),
            "ln1_b": jnp.zeros((WIDTH,), jnp.float32),
            "in_proj_w": nrm(bk[0], (WIDTH, 3 * WIDTH)),
            "in_proj_b": jnp.zeros((3 * WIDTH,), jnp.float32),
            "out_proj_w": nrm(bk[1], (WIDTH, WIDTH)),
            "out_proj_b": jnp.zeros((WIDTH,), jnp.float32),
            "ln2_g": jnp.ones((WIDTH,), jnp.float32),
            "ln2_b": jnp.zeros((WIDTH,), jnp.float32),
            "fc_w": nrm(bk[2], (WIDTH, MLP_DIM)),
            "fc_b": jnp.zeros((MLP_DIM,), jnp.float32),
            "proj_w": nrm(bk[3], (MLP_DIM, WIDTH)),
            "proj_b": jnp.zeros((WIDTH,), jnp.float32),
        })
    return params


def stack_blocks(blocks):
    """Stack per-layer params along a leading LAYERS axis (all layers resident in VMEM,
    selected by dynamic index inside the kernel). Matmul weights cast to bf16."""
    def st(name, cast_bf16=False, row=False):
        a = jnp.stack([blk[name] for blk in blocks])
        if row:
            a = a.reshape(a.shape[0], 1, a.shape[-1])
        if cast_bf16:
            a = a.astype(jnp.bfloat16)
        return a

    return {
        "ln1_g": st("ln1_g", row=True), "ln1_b": st("ln1_b", row=True),
        "wqkv": st("in_proj_w", cast_bf16=True), "bqkv": st("in_proj_b", row=True),
        "wout": st("out_proj_w", cast_bf16=True), "bout": st("out_proj_b", row=True),
        "ln2_g": st("ln2_g", row=True), "ln2_b": st("ln2_b", row=True),
        "wfc": st("fc_w", cast_bf16=True), "bfc": st("fc_b", row=True),
        "wproj": st("proj_w", cast_bf16=True), "bproj": st("proj_b", row=True),
    }


def _pick_batch_tile(batch):
    # Flatten batch into the matmul M dimension. Keep >=2 batch blocks for larger
    # batches so v7x's two TensorCores both get work on the "parallel" axis; at
    # tiny batch a single block minimizes grid-step overhead.
    if batch >= 16:
        return 8
    if batch >= 4:
        return (batch + 1) // 2
    return max(batch, 1)


# ---------------- forward pass (= ImageCLIP.forward = encode_image) ----------------

def encode_image(params, image):
    # image: (B, C, H, W) -- NCHW as in PyTorch
    B, C, H, W = image.shape
    gh, gw = H // PATCH, W // PATCH
    n_patches = gh * gw
    s_real = n_patches + 1
    s_pad = ((s_real + 7) // 8) * 8                 # pad sequence to a multiple of 8
    cpp = C * PATCH * PATCH

    bt = _pick_batch_tile(B)
    bp = ((B + bt - 1) // bt) * bt                  # pad batch to a multiple of the tile
    m = bt * s_pad

    # patchify (glue): (B,C,gh,p,gw,p) -> (B,gh,gw,C,p,p) -> rows of (c,u,v),
    # matching how nn.Conv2d(kernel=stride=p) weights flatten.
    x = image.reshape(B, C, gh, PATCH, gw, PATCH)
    x = x.transpose(0, 2, 4, 1, 3, 5).reshape(B, n_patches, cpp)
    # row 0 reserved for CLS (zero patch, conv1 bias-free); rows >= s_real and batch
    # rows >= B are padding.
    x = jnp.pad(x, ((0, bp - B), (1, s_pad - s_real), (0, 0)))
    patches_pad = x.astype(jnp.bfloat16)

    # token bias: class embedding on row 0 + positional embedding on real rows,
    # tiled over the batch tile so the kernel adds it to the flattened rows directly.
    tok_bias = jnp.zeros((s_pad, WIDTH), jnp.float32)
    tok_bias = tok_bias.at[0].set(params["class_emb"] + params["pos_emb"][0])
    tok_bias = tok_bias.at[1:s_real].set(params["pos_emb"][1:])
    tok_bias_tiled = jnp.tile(tok_bias, (bt, 1))

    # attention bias, hoisted out of the kernel: key j is valid for query i iff it
    # belongs to the same image of the batch tile and is a real (non-padded) token.
    img_id = jnp.arange(m) // s_pad
    tok_id = jnp.arange(m) % s_pad
    valid = (img_id[:, None] == img_id[None, :]) & (tok_id[None, :] < s_real)
    mask_bias = jnp.where(valid, 0.0, NEG_INF).astype(jnp.float32)

    # {0,1} lane masks selecting each head's columns (replaces width-8 lane slices).
    head_mask = (jnp.arange(WIDTH)[None, :] // HEAD_DIM ==
                 jnp.arange(HEADS)[:, None]).astype(jnp.bfloat16)

    stacked = stack_blocks(params["blocks"])

    out = clip_encode_pallas(
        patches_pad, tok_bias_tiled, mask_bias, head_mask,
        params["conv1_w"].astype(jnp.bfloat16),
        params["ln_pre_g"].reshape(1, WIDTH).astype(jnp.float32),
        params["ln_pre_b"].reshape(1, WIDTH).astype(jnp.float32),
        stacked,
        params["ln_post_g"].reshape(1, WIDTH).astype(jnp.float32),
        params["ln_post_b"].reshape(1, WIDTH).astype(jnp.float32),
        params["proj"].astype(jnp.bfloat16),
        bt=bt)
    return out[:B]


if __name__ == "__main__":
    key = jax.random.PRNGKey(0)
    k_img, k_par = jax.random.split(key)

    B, C, H, W = 2, 3, 16, 16
    image = jax.random.normal(k_img, (B, C, H, W), dtype=jnp.float32)

    params = init_params(k_par, in_channels=C, image_size=H)

    out = jax.jit(encode_image)(params, image)
    out = jax.block_until_ready(out)
    assert out.shape == (B, EMBED_DIM)
    assert jnp.all(jnp.isfinite(out))
    print("KERNEL_OK")
</pallas_src>

<mosaic_0001>
module attributes {stable_mosaic.version = 11 : i64} {
  func.func @_clip_fused_kernel(%arg0: i32, %arg1: i32, %arg2: memref<2x8x192xbf16, #tpu.memory_space<vmem>>, %arg3: memref<192x32xbf16, #tpu.memory_space<vmem>>, %arg4: memref<16x32xf32, #tpu.memory_space<vmem>>, %arg5: memref<1x32xf32, #tpu.memory_space<vmem>>, %arg6: memref<1x32xf32, #tpu.memory_space<vmem>>, %arg7: memref<16x16xf32, #tpu.memory_space<vmem>>, %arg8: memref<4x32xbf16, #tpu.memory_space<vmem>>, %arg9: memref<2x1x32xf32, #tpu.memory_space<vmem>>, %arg10: memref<2x1x32xf32, #tpu.memory_space<vmem>>, %arg11: memref<2x32x96xbf16, #tpu.memory_space<vmem>>, %arg12: memref<2x1x96xf32, #tpu.memory_space<vmem>>, %arg13: memref<2x32x32xbf16, #tpu.memory_space<vmem>>, %arg14: memref<2x1x32xf32, #tpu.memory_space<vmem>>, %arg15: memref<2x1x32xf32, #tpu.memory_space<vmem>>, %arg16: memref<2x1x32xf32, #tpu.memory_space<vmem>>, %arg17: memref<2x32x128xbf16, #tpu.memory_space<vmem>>, %arg18: memref<2x1x128xf32, #tpu.memory_space<vmem>>, %arg19: memref<2x128x32xbf16, #tpu.memory_space<vmem>>, %arg20: memref<2x1x32xf32, #tpu.memory_space<vmem>>, %arg21: memref<1x32xf32, #tpu.memory_space<vmem>>, %arg22: memref<1x32xf32, #tpu.memory_space<vmem>>, %arg23: memref<32x16xbf16, #tpu.memory_space<vmem>>, %arg24: memref<1x2x16xf32, #tpu.memory_space<vmem>>, %arg25: memref<16x32xf32, #tpu.memory_space<vmem>>) attributes {dimension_semantics = [#tpu.dimension_semantics<parallel>, #tpu.dimension_semantics<arbitrary>], iteration_bounds = array<i64: 1, 2>, scalar_prefetch = 0 : i64, scratch_operands = 1 : i64, tpu.core_type = #tpu.core_type<tc>, window_params = [{transform_indices = @transform_0, window_bounds = array<i64: 2, 8, 192>}, {pipeline_mode = #tpu.pipeline_mode<synchronous>, transform_indices = @transform_1, window_bounds = array<i64: 192, 32>}, {pipeline_mode = #tpu.pipeline_mode<synchronous>, transform_indices = @transform_2, window_bounds = array<i64: 16, 32>}, {pipeline_mode = #tpu.pipeline_mode<synchronous>, transform_indices = @transform_3, window_bounds = array<i64: 1, 32>}, {pipeline_mode = #tpu.pipeline_mode<synchronous>, transform_indices = @transform_4, window_bounds = array<i64: 1, 32>}, {pipeline_mode = #tpu.pipeline_mode<synchronous>, transform_indices = @transform_5, window_bounds = array<i64: 16, 16>}, {pipeline_mode = #tpu.pipeline_mode<synchronous>, transform_indices = @transform_6, window_bounds = array<i64: 4, 32>}, {pipeline_mode = #tpu.pipeline_mode<synchronous>, transform_indices = @transform_7, window_bounds = array<i64: 2, 1, 32>}, {pipeline_mode = #tpu.pipeline_mode<synchronous>, transform_indices = @transform_8, window_bounds = array<i64: 2, 1, 32>}, {pipeline_mode = #tpu.pipeline_mode<synchronous>, transform_indices = @transform_9, window_bounds = array<i64: 2, 32, 96>}, {pipeline_mode = #tpu.pipeline_mode<synchronous>, transform_indices = @transform_10, window_bounds = array<i64: 2, 1, 96>}, {pipeline_mode = #tpu.pipeline_mode<synchronous>, transform_indices = @transform_11, window_bounds = array<i64: 2, 32, 32>}, {pipeline_mode = #tpu.pipeline_mode<synchronous>, transform_indices = @transform_12, window_bounds = array<i64: 2, 1, 32>}, {pipeline_mode = #tpu.pipeline_mode<synchronous>, transform_indices = @transform_13, window_bounds = array<i64: 2, 1, 32>}, {pipeline_mode = #tpu.pipeline_mode<synchronous>, transform_indices = @transform_14, window_bounds = array<i64: 2, 1, 32>}, {pipeline_mode = #tpu.pipeline_mode<synchronous>, transform_indices = @transform_15, window_bounds = array<i64: 2, 32, 128>}, {pipeline_mode = #tpu.pipeline_mode<synchronous>, transform_indices = @transform_16, window_bounds = array<i64: 2, 1, 128>}, {pipeline_mode = #tpu.pipeline_mode<synchronous>, transform_indices = @transform_17, window_bounds = array<i64: 2, 128, 32>}, {pipeline_mode = #tpu.pipeline_mode<synchronous>, transform_indices = @transform_18, window_bounds = array<i64: 2, 1, 32>}, {pipeline_mode = #tpu.pipeline_mode<synchronous>, transform_indices = @transform_19, window_bounds = array<i64: 1, 32>}, {pipeline_mode = #tpu.pipeline_mode<synchronous>, transform_indices = @transform_20, window_bounds = array<i64: 1, 32>}, {pipeline_mode = #tpu.pipeline_mode<synchronous>, transform_indices = @transform_21, window_bounds = array<i64: 32, 16>}, {transform_indices = @transform_22, window_bounds = array<i64: 1, 2, 16>}]} {
    %c0_i32 = arith.constant 0 : i32
    %0 = arith.cmpi eq, %arg1, %c0_i32 : i32
    %1 = arith.extui %0 : i1 to i32
    %c0_i32_0 = arith.constant 0 : i32
    %2 = arith.cmpi ne, %1, %c0_i32_0 : i32
    scf.if %2 {
      %c0_69 = arith.constant 0 : index
      %c0_70 = arith.constant 0 : index
      %c0_71 = arith.constant 0 : index
      %207 = vector.load %arg2[%c0_69, %c0_70, %c0_71] : memref<2x8x192xbf16, #tpu.memory_space<vmem>>, vector<2x8x192xbf16>
      %208 = vector.shape_cast %207 : vector<2x8x192xbf16> to vector<16x192xbf16>
      %c0_72 = arith.constant 0 : index
      %c0_73 = arith.constant 0 : index
      %209 = vector.load %arg3[%c0_72, %c0_73] : memref<192x32xbf16, #tpu.memory_space<vmem>>, vector<192x32xbf16>
      %cst_74 = arith.constant dense<0.000000e+00> : vector<16x32xf32>
      %210 = tpu.matmul %208, %209, %cst_74 {dimension_numbers = #tpu.dot_dimension_numbers<[1], [0], [0], [1], [0, 0, 1, 1], [], []>} : vector<16x192xbf16>, vector<192x32xbf16>, vector<16x32xf32> -> vector<16x32xf32>
      %c0_75 = arith.constant 0 : index
      %c0_76 = arith.constant 0 : index
      %211 = vector.load %arg4[%c0_75, %c0_76] : memref<16x32xf32, #tpu.memory_space<vmem>>, vector<16x32xf32>
      %212 = arith.addf %210, %211 : vector<16x32xf32>
      %c0_77 = arith.constant 0 : index
      %c0_78 = arith.constant 0 : index
      %213 = vector.load %arg5[%c0_77, %c0_78] : memref<1x32xf32, #tpu.memory_space<vmem>>, vector<1x32xf32>
      %c0_79 = arith.constant 0 : index
      %c0_80 = arith.constant 0 : index
      %214 = vector.load %arg6[%c0_79, %c0_80] : memref<1x32xf32, #tpu.memory_space<vmem>>, vector<1x32xf32>
      %cst_81 = arith.constant dense<0.000000e+00> : vector<16xf32>
      %215 = vector.multi_reduction <add>, %212, %cst_81 [1] : vector<16x32xf32> to vector<16xf32>
      %216 = vector.shape_cast %215 : vector<16xf32> to vector<16x1xf32>
      %cst_82 = arith.constant 3.200000e+01 : f32
      %217 = vector.broadcast %cst_82 : f32 to vector<16x1xf32>
      %218 = arith.divf %216, %217 : vector<16x1xf32>
      %219 = vector.broadcast %218 : vector<16x1xf32> to vector<16x32xf32>
      %220 = arith.subf %212, %219 : vector<16x32xf32>
      %221 = arith.mulf %220, %220 : vector<16x32xf32>
      %cst_83 = arith.constant dense<0.000000e+00> : vector<16xf32>
      %222 = vector.multi_reduction <add>, %221, %cst_83 [1] : vector<16x32xf32> to vector<16xf32>
      %223 = vector.shape_cast %222 : vector<16xf32> to vector<16x1xf32>
      %cst_84 = arith.constant 3.200000e+01 : f32
      %224 = vector.broadcast %cst_84 : f32 to vector<16x1xf32>
      %225 = arith.divf %223, %224 : vector<16x1xf32>
      %226 = vector.broadcast %218 : vector<16x1xf32> to vector<16x32xf32>
      %227 = arith.subf %212, %226 : vector<16x32xf32>
      %cst_85 = arith.constant 9.99999974E-6 : f32
      %228 = vector.broadcast %cst_85 : f32 to vector<16x1xf32>
      %229 = arith.addf %225, %228 : vector<16x1xf32>
      %230 = math.rsqrt %229 : vector<16x1xf32>
      %231 = vector.broadcast %230 : vector<16x1xf32> to vector<16x32xf32>
      %232 = arith.mulf %227, %231 : vector<16x32xf32>
      %233 = vector.broadcast %213 : vector<1x32xf32> to vector<16x32xf32>
      %234 = arith.mulf %232, %233 : vector<16x32xf32>
      %235 = vector.broadcast %214 : vector<1x32xf32> to vector<16x32xf32>
      %236 = arith.addf %234, %235 : vector<16x32xf32>
      %c0_86 = arith.constant 0 : index
      %c0_87 = arith.constant 0 : index
      %237 = vector.load %arg25[%c0_86, %c0_87] : memref<16x32xf32, #tpu.memory_space<vmem>>, vector<16x32xf32>
      tpu.vector_store %arg25[%c0_86, %c0_87], %236 {strides = array<i32>} : memref<16x32xf32, #tpu.memory_space<vmem>>, vector<16x32xf32>,
    } else {
    }
    %c0 = arith.constant 0 : index
    %c0_1 = arith.constant 0 : index
    %3 = vector.load %arg25[%c0, %c0_1] : memref<16x32xf32, #tpu.memory_space<vmem>>, vector<16x32xf32>
    %4 = arith.index_cast %arg1 : i32 to index
    %c0_2 = arith.constant 0 : index
    %c0_3 = arith.constant 0 : index
    %5 = vector.load %arg11[%4, %c0_2, %c0_3] : memref<2x32x96xbf16, #tpu.memory_space<vmem>>, vector<1x32x96xbf16>
    %6 = vector.shape_cast %5 : vector<1x32x96xbf16> to vector<32x96xbf16>
    %7 = arith.index_cast %arg1 : i32 to index
    %c0_4 = arith.constant 0 : index
    %c0_5 = arith.constant 0 : index
    %8 = vector.load %arg12[%7, %c0_4, %c0_5] : memref<2x1x96xf32, #tpu.memory_space<vmem>>, vector<1x1x96xf32>
    %9 = vector.shape_cast %8 : vector<1x1x96xf32> to vector<1x96xf32>
    %10 = arith.index_cast %arg1 : i32 to index
    %c0_6 = arith.constant 0 : index
    %c0_7 = arith.constant 0 : index
    %11 = vector.load %arg13[%10, %c0_6, %c0_7] : memref<2x32x32xbf16, #tpu.memory_space<vmem>>, vector<1x32x32xbf16>
    %12 = vector.shape_cast %11 : vector<1x32x32xbf16> to vector<32x32xbf16>
    %13 = arith.index_cast %arg1 : i32 to index
    %c0_8 = arith.constant 0 : index
    %c0_9 = arith.constant 0 : index
    %14 = vector.load %arg14[%13, %c0_8, %c0_9] : memref<2x1x32xf32, #tpu.memory_space<vmem>>, vector<1x1x32xf32>
    %15 = vector.shape_cast %14 : vector<1x1x32xf32> to vector<1x32xf32>
    %16 = arith.index_cast %arg1 : i32 to index
    %c0_10 = arith.constant 0 : index
    %c0_11 = arith.constant 0 : index
    %17 = vector.load %arg17[%16, %c0_10, %c0_11] : memref<2x32x128xbf16, #tpu.memory_space<vmem>>, vector<1x32x128xbf16>
    %18 = vector.shape_cast %17 : vector<1x32x128xbf16> to vector<32x128xbf16>
    %19 = arith.index_cast %arg1 : i32 to index
    %c0_12 = arith.constant 0 : index
    %c0_13 = arith.constant 0 : index
    %20 = vector.load %arg18[%19, %c0_12, %c0_13] : memref<2x1x128xf32, #tpu.memory_space<vmem>>, vector<1x1x128xf32>
    %21 = vector.shape_cast %20 : vector<1x1x128xf32> to vector<1x128xf32>
    %22 = arith.index_cast %arg1 : i32 to index
    %c0_14 = arith.constant 0 : index
    %c0_15 = arith.constant 0 : index
    %23 = vector.load %arg19[%22, %c0_14, %c0_15] : memref<2x128x32xbf16, #tpu.memory_space<vmem>>, vector<1x128x32xbf16>
    %24 = vector.shape_cast %23 : vector<1x128x32xbf16> to vector<128x32xbf16>
    %25 = arith.index_cast %arg1 : i32 to index
    %c0_16 = arith.constant 0 : index
    %c0_17 = arith.constant 0 : index
    %26 = vector.load %arg20[%25, %c0_16, %c0_17] : memref<2x1x32xf32, #tpu.memory_space<vmem>>, vector<1x1x32xf32>
    %27 = vector.shape_cast %26 : vector<1x1x32xf32> to vector<1x32xf32>
    %28 = arith.index_cast %arg1 : i32 to index
    %c0_18 = arith.constant 0 : index
    %c0_19 = arith.constant 0 : index
    %29 = vector.load %arg9[%28, %c0_18, %c0_19] : memref<2x1x32xf32, #tpu.memory_space<vmem>>, vector<1x1x32xf32>
    %30 = vector.shape_cast %29 : vector<1x1x32xf32> to vector<1x32xf32>
    %31 = arith.index_cast %arg1 : i32 to index
    %c0_20 = arith.constant 0 : index
    %c0_21 = arith.constant 0 : index
    %32 = vector.load %arg10[%31, %c0_20, %c0_21] : memref<2x1x32xf32, #tpu.memory_space<vmem>>, vector<1x1x32xf32>
    %33 = vector.shape_cast %32 : vector<1x1x32xf32> to vector<1x32xf32>
    %cst = arith.constant dense<0.000000e+00> : vector<16xf32>
    %34 = vector.multi_reduction <add>, %3, %cst [1] : vector<16x32xf32> to vector<16xf32>
    %35 = vector.shape_cast %34 : vector<16xf32> to vector<16x1xf32>
    %cst_22 = arith.constant 3.200000e+01 : f32
    %36 = vector.broadcast %cst_22 : f32 to vector<16x1xf32>
    %37 = arith.divf %35, %36 : vector<16x1xf32>
    %38 = vector.broadcast %37 : vector<16x1xf32> to vector<16x32xf32>
    %39 = arith.subf %3, %38 : vector<16x32xf32>
    %40 = arith.mulf %39, %39 : vector<16x32xf32>
    %cst_23 = arith.constant dense<0.000000e+00> : vector<16xf32>
    %41 = vector.multi_reduction <add>, %40, %cst_23 [1] : vector<16x32xf32> to vector<16xf32>
    %42 = vector.shape_cast %41 : vector<16xf32> to vector<16x1xf32>
    %cst_24 = arith.constant 3.200000e+01 : f32
    %43 = vector.broadcast %cst_24 : f32 to vector<16x1xf32>
    %44 = arith.divf %42, %43 : vector<16x1xf32>
    %45 = vector.broadcast %37 : vector<16x1xf32> to vector<16x32xf32>
    %46 = arith.subf %3, %45 : vector<16x32xf32>
    %cst_25 = arith.constant 9.99999974E-6 : f32
    %47 = vector.broadcast %cst_25 : f32 to vector<16x1xf32>
    %48 = arith.addf %44, %47 : vector<16x1xf32>
    %49 = math.rsqrt %48 : vector<16x1xf32>
    %50 = vector.broadcast %49 : vector<16x1xf32> to vector<16x32xf32>
    %51 = arith.mulf %46, %50 : vector<16x32xf32>
    %52 = vector.broadcast %30 : vector<1x32xf32> to vector<16x32xf32>
    %53 = arith.mulf %51, %52 : vector<16x32xf32>
    %54 = vector.broadcast %33 : vector<1x32xf32> to vector<16x32xf32>
    %55 = arith.addf %53, %54 : vector<16x32xf32>
    %56 = arith.truncf %55 : vector<16x32xf32> to vector<16x32xbf16>
    %cst_26 = arith.constant dense<0.000000e+00> : vector<16x96xf32>
    %57 = tpu.matmul %56, %6, %cst_26 {dimension_numbers = #tpu.dot_dimension_numbers<[1], [0], [0], [1], [0, 0, 1, 1], [], []>} : vector<16x32xbf16>, vector<32x96xbf16>, vector<16x96xf32> -> vector<16x96xf32>
    %58 = vector.broadcast %9 : vector<1x96xf32> to vector<16x96xf32>
    %59 = arith.addf %57, %58 : vector<16x96xf32>
    %60 = vector.extract_strided_slice %59 {offsets = [0, 0], sizes = [16, 32], strides = [1, 1]} : vector<16x96xf32> to vector<16x32xf32>
    %61 = arith.truncf %60 : vector<16x32xf32> to vector<16x32xbf16>
    %62 = vector.extract_strided_slice %59 {offsets = [0, 32], sizes = [16, 32], strides = [1, 1]} : vector<16x96xf32> to vector<16x32xf32>
    %63 = arith.truncf %62 : vector<16x32xf32> to vector<16x32xbf16>
    %64 = vector.extract_strided_slice %59 {offsets = [0, 64], sizes = [16, 32], strides = [1, 1]} : vector<16x96xf32> to vector<16x32xf32>
    %65 = arith.truncf %64 : vector<16x32xf32> to vector<16x32xbf16>
    %c0_27 = arith.constant 0 : index
    %c0_28 = arith.constant 0 : index
    %66 = vector.load %arg7[%c0_27, %c0_28] : memref<16x16xf32, #tpu.memory_space<vmem>>, vector<16x16xf32>
    %c0_29 = arith.constant 0 : index
    %c0_30 = arith.constant 0 : index
    %67 = vector.load %arg8[%c0_29, %c0_30] : memref<4x32xbf16, #tpu.memory_space<vmem>>, vector<4x32xbf16>
    %cst_31 = arith.constant 0.000000e+00 : f32
    %68 = vector.broadcast %cst_31 : f32 to vector<16x32xf32>
    %69 = vector.extract_strided_slice %67 {offsets = [0, 0], sizes = [1, 32], strides = [1, 1]} : vector<4x32xbf16> to vector<1x32xbf16>
    %70 = vector.broadcast %69 : vector<1x32xbf16> to vector<16x32xbf16>
    %71 = arith.mulf %61, %70 : vector<16x32xbf16>
    %cst_32 = arith.constant dense<0.000000e+00> : vector<16x16xf32>
    %72 = tpu.matmul %71, %63, %cst_32 {dimension_numbers = #tpu.dot_dimension_numbers<[1], [1], [0], [0], [0, 0, 1, 0], [], []>} : vector<16x32xbf16>, vector<16x32xbf16>, vector<16x16xf32> -> vector<16x16xf32>
    %cst_33 = arith.constant 0.353553385 : f32
    %73 = vector.broadcast %cst_33 : f32 to vector<16x16xf32>
    %74 = arith.mulf %72, %73 : vector<16x16xf32>
    %75 = arith.addf %74, %66 : vector<16x16xf32>
    %cst_34 = arith.constant dense<0xFF800000> : vector<16xf32>
    %76 = vector.multi_reduction <maximumf>, %75, %cst_34 [1] : vector<16x16xf32> to vector<16xf32>
    %77 = vector.shape_cast %76 : vector<16xf32> to vector<16x1xf32>
    %78 = vector.broadcast %77 : vector<16x1xf32> to vector<16x16xf32>
    %79 = arith.subf %75, %78 : vector<16x16xf32>
    %80 = math.exp %79 : vector<16x16xf32>
    %cst_35 = arith.constant dense<0.000000e+00> : vector<16xf32>
    %81 = vector.multi_reduction <add>, %80, %cst_35 [1] : vector<16x16xf32> to vector<16xf32>
    %82 = vector.shape_cast %81 : vector<16xf32> to vector<16x1xf32>
    %83 = vector.broadcast %82 : vector<16x1xf32> to vector<16x16xf32>
    %84 = arith.divf %80, %83 : vector<16x16xf32>
    %85 = arith.truncf %84 : vector<16x16xf32> to vector<16x16xbf16>
    %86 = vector.broadcast %69 : vector<1x32xbf16> to vector<16x32xbf16>
    %87 = arith.mulf %65, %86 : vector<16x32xbf16>
    %cst_36 = arith.constant dense<0.000000e+00> : vector<16x32xf32>
    %88 = tpu.matmul %85, %87, %cst_36 {dimension_numbers = #tpu.dot_dimension_numbers<[1], [0], [0], [1], [0, 0, 1, 1], [], []>} : vector<16x16xbf16>, vector<16x32xbf16>, vector<16x32xf32> -> vector<16x32xf32>
    %89 = arith.addf %68, %88 : vector<16x32xf32>
    %90 = vector.extract_strided_slice %67 {offsets = [1, 0], sizes = [1, 32], strides = [1, 1]} : vector<4x32xbf16> to vector<1x32xbf16>
    %91 = vector.broadcast %90 : vector<1x32xbf16> to vector<16x32xbf16>
    %92 = arith.mulf %61, %91 : vector<16x32xbf16>
    %cst_37 = arith.constant dense<0.000000e+00> : vector<16x16xf32>
    %93 = tpu.matmul %92, %63, %cst_37 {dimension_numbers = #tpu.dot_dimension_numbers<[1], [1], [0], [0], [0, 0, 1, 0], [], []>} : vector<16x32xbf16>, vector<16x32xbf16>, vector<16x16xf32> -> vector<16x16xf32>
    %cst_38 = arith.constant 0.353553385 : f32
    %94 = vector.broadcast %cst_38 : f32 to vector<16x16xf32>
    %95 = arith.mulf %93, %94 : vector<16x16xf32>
    %96 = arith.addf %95, %66 : vector<16x16xf32>
    %cst_39 = arith.constant dense<0xFF800000> : vector<16xf32>
    %97 = vector.multi_reduction <maximumf>, %96, %cst_39 [1] : vector<16x16xf32> to vector<16xf32>
    %98 = vector.shape_cast %97 : vector<16xf32> to vector<16x1xf32>
    %99 = vector.broadcast %98 : vector<16x1xf32> to vector<16x16xf32>
    %100 = arith.subf %96, %99 : vector<16x16xf32>
    %101 = math.exp %100 : vector<16x16xf32>
    %cst_40 = arith.constant dense<0.000000e+00> : vector<16xf32>
    %102 = vector.multi_reduction <add>, %101, %cst_40 [1] : vector<16x16xf32> to vector<16xf32>
    %103 = vector.shape_cast %102 : vector<16xf32> to vector<16x1xf32>
    %104 = vector.broadcast %103 : vector<16x1xf32> to vector<16x16xf32>
    %105 = arith.divf %101, %104 : vector<16x16xf32>
    %106 = arith.truncf %105 : vector<16x16xf32> to vector<16x16xbf16>
    %107 = vector.broadcast %90 : vector<1x32xbf16> to vector<16x32xbf16>
    %108 = arith.mulf %65, %107 : vector<16x32xbf16>
    %cst_41 = arith.constant dense<0.000000e+00> : vector<16x32xf32>
    %109 = tpu.matmul %106, %108, %cst_41 {dimension_numbers = #tpu.dot_dimension_numbers<[1], [0], [0], [1], [0, 0, 1, 1], [], []>} : vector<16x16xbf16>, vector<16x32xbf16>, vector<16x32xf32> -> vector<16x32xf32>
    %110 = arith.addf %89, %109 : vector<16x32xf32>
    %111 = vector.extract_strided_slice %67 {offsets = [2, 0], sizes = [1, 32], strides = [1, 1]} : vector<4x32xbf16> to vector<1x32xbf16>
    %112 = vector.broadcast %111 : vector<1x32xbf16> to vector<16x32xbf16>
    %113 = arith.mulf %61, %112 : vector<16x32xbf16>
    %cst_42 = arith.constant dense<0.000000e+00> : vector<16x16xf32>
    %114 = tpu.matmul %113, %63, %cst_42 {dimension_numbers = #tpu.dot_dimension_numbers<[1], [1], [0], [0], [0, 0, 1, 0], [], []>} : vector<16x32xbf16>, vector<16x32xbf16>, vector<16x16xf32> -> vector<16x16xf32>
    %cst_43 = arith.constant 0.353553385 : f32
    %115 = vector.broadcast %cst_43 : f32 to vector<16x16xf32>
    %116 = arith.mulf %114, %115 : vector<16x16xf32>
    %117 = arith.addf %116, %66 : vector<16x16xf32>
    %cst_44 = arith.constant dense<0xFF800000> : vector<16xf32>
    %118 = vector.multi_reduction <maximumf>, %117, %cst_44 [1] : vector<16x16xf32> to vector<16xf32>
    %119 = vector.shape_cast %118 : vector<16xf32> to vector<16x1xf32>
    %120 = vector.broadcast %119 : vector<16x1xf32> to vector<16x16xf32>
    %121 = arith.subf %117, %120 : vector<16x16xf32>
    %122 = math.exp %121 : vector<16x16xf32>
    %cst_45 = arith.constant dense<0.000000e+00> : vector<16xf32>
    %123 = vector.multi_reduction <add>, %122, %cst_45 [1] : vector<16x16xf32> to vector<16xf32>
    %124 = vector.shape_cast %123 : vector<16xf32> to vector<16x1xf32>
    %125 = vector.broadcast %124 : vector<16x1xf32> to vector<16x16xf32>
    %126 = arith.divf %122, %125 : vector<16x16xf32>
    %127 = arith.truncf %126 : vector<16x16xf32> to vector<16x16xbf16>
    %128 = vector.broadcast %111 : vector<1x32xbf16> to vector<16x32xbf16>
    %129 = arith.mulf %65, %128 : vector<16x32xbf16>
    %cst_46 = arith.constant dense<0.000000e+00> : vector<16x32xf32>
    %130 = tpu.matmul %127, %129, %cst_46 {dimension_numbers = #tpu.dot_dimension_numbers<[1], [0], [0], [1], [0, 0, 1, 1], [], []>} : vector<16x16xbf16>, vector<16x32xbf16>, vector<16x32xf32> -> vector<16x32xf32>
    %131 = arith.addf %110, %130 : vector<16x32xf32>
    %132 = vector.extract_strided_slice %67 {offsets = [3, 0], sizes = [1, 32], strides = [1, 1]} : vector<4x32xbf16> to vector<1x32xbf16>
    %133 = vector.broadcast %132 : vector<1x32xbf16> to vector<16x32xbf16>
    %134 = arith.mulf %61, %133 : vector<16x32xbf16>
    %cst_47 = arith.constant dense<0.000000e+00> : vector<16x16xf32>
    %135 = tpu.matmul %134, %63, %cst_47 {dimension_numbers = #tpu.dot_dimension_numbers<[1], [1], [0], [0], [0, 0, 1, 0], [], []>} : vector<16x32xbf16>, vector<16x32xbf16>, vector<16x16xf32> -> vector<16x16xf32>
    %cst_48 = arith.constant 0.353553385 : f32
    %136 = vector.broadcast %cst_48 : f32 to vector<16x16xf32>
    %137 = arith.mulf %135, %136 : vector<16x16xf32>
    %138 = arith.addf %137, %66 : vector<16x16xf32>
    %cst_49 = arith.constant dense<0xFF800000> : vector<16xf32>
    %139 = vector.multi_reduction <maximumf>, %138, %cst_49 [1] : vector<16x16xf32> to vector<16xf32>
    %140 = vector.shape_cast %139 : vector<16xf32> to vector<16x1xf32>
    %141 = vector.broadcast %140 : vector<16x1xf32> to vector<16x16xf32>
    %142 = arith.subf %138, %141 : vector<16x16xf32>
    %143 = math.exp %142 : vector<16x16xf32>
    %cst_50 = arith.constant dense<0.000000e+00> : vector<16xf32>
    %144 = vector.multi_reduction <add>, %143, %cst_50 [1] : vector<16x16xf32> to vector<16xf32>
    %145 = vector.shape_cast %144 : vector<16xf32> to vector<16x1xf32>
    %146 = vector.broadcast %145 : vector<16x1xf32> to vector<16x16xf32>
    %147 = arith.divf %143, %146 : vector<16x16xf32>
    %148 = arith.truncf %147 : vector<16x16xf32> to vector<16x16xbf16>
    %149 = vector.broadcast %132 : vector<1x32xbf16> to vector<16x32xbf16>
    %150 = arith.mulf %65, %149 : vector<16x32xbf16>
    %cst_51 = arith.constant dense<0.000000e+00> : vector<16x32xf32>
    %151 = tpu.matmul %148, %150, %cst_51 {dimension_numbers = #tpu.dot_dimension_numbers<[1], [0], [0], [1], [0, 0, 1, 1], [], []>} : vector<16x16xbf16>, vector<16x32xbf16>, vector<16x32xf32> -> vector<16x32xf32>
    %152 = arith.addf %131, %151 : vector<16x32xf32>
    %153 = arith.truncf %152 : vector<16x32xf32> to vector<16x32xbf16>
    %cst_52 = arith.constant dense<0.000000e+00> : vector<16x32xf32>
    %154 = tpu.matmul %153, %12, %cst_52 {dimension_numbers = #tpu.dot_dimension_numbers<[1], [0], [0], [1], [0, 0, 1, 1], [], []>} : vector<16x32xbf16>, vector<32x32xbf16>, vector<16x32xf32> -> vector<16x32xf32>
    %155 = vector.broadcast %15 : vector<1x32xf32> to vector<16x32xf32>
    %156 = arith.addf %154, %155 : vector<16x32xf32>
    %157 = arith.addf %3, %156 : vector<16x32xf32>
    %158 = arith.index_cast %arg1 : i32 to index
    %c0_53 = arith.constant 0 : index
    %c0_54 = arith.constant 0 : index
    %159 = vector.load %arg15[%158, %c0_53, %c0_54] : memref<2x1x32xf32, #tpu.memory_space<vmem>>, vector<1x1x32xf32>
    %160 = vector.shape_cast %159 : vector<1x1x32xf32> to vector<1x32xf32>
    %161 = arith.index_cast %arg1 : i32 to index
    %c0_55 = arith.constant 0 : index
    %c0_56 = arith.constant 0 : index
    %162 = vector.load %arg16[%161, %c0_55, %c0_56] : memref<2x1x32xf32, #tpu.memory_space<vmem>>, vector<1x1x32xf32>
    %163 = vector.shape_cast %162 : vector<1x1x32xf32> to vector<1x32xf32>
    %cst_57 = arith.constant dense<0.000000e+00> : vector<16xf32>
    %164 = vector.multi_reduction <add>, %157, %cst_57 [1] : vector<16x32xf32> to vector<16xf32>
    %165 = vector.shape_cast %164 : vector<16xf32> to vector<16x1xf32>
    %cst_58 = arith.constant 3.200000e+01 : f32
    %166 = vector.broadcast %cst_58 : f32 to vector<16x1xf32>
    %167 = arith.divf %165, %166 : vector<16x1xf32>
    %168 = vector.broadcast %167 : vector<16x1xf32> to vector<16x32xf32>
    %169 = arith.subf %157, %168 : vector<16x32xf32>
    %170 = arith.mulf %169, %169 : vector<16x32xf32>
    %cst_59 = arith.constant dense<0.000000e+00> : vector<16xf32>
    %171 = vector.multi_reduction <add>, %170, %cst_59 [1] : vector<16x32xf32> to vector<16xf32>
    %172 = vector.shape_cast %171 : vector<16xf32> to vector<16x1xf32>
    %cst_60 = arith.constant 3.200000e+01 : f32
    %173 = vector.broadcast %cst_60 : f32 to vector<16x1xf32>
    %174 = arith.divf %172, %173 : vector<16x1xf32>
    %175 = vector.broadcast %167 : vector<16x1xf32> to vector<16x32xf32>
    %176 = arith.subf %157, %175 : vector<16x32xf32>
    %cst_61 = arith.constant 9.99999974E-6 : f32
    %177 = vector.broadcast %cst_61 : f32 to vector<16x1xf32>
    %178 = arith.addf %174, %177 : vector<16x1xf32>
    %179 = math.rsqrt %178 : vector<16x1xf32>
    %180 = vector.broadcast %179 : vector<16x1xf32> to vector<16x32xf32>
    %181 = arith.mulf %176, %180 : vector<16x32xf32>
    %182 = vector.broadcast %160 : vector<1x32xf32> to vector<16x32xf32>
    %183 = arith.mulf %181, %182 : vector<16x32xf32>
    %184 = vector.broadcast %163 : vector<1x32xf32> to vector<16x32xf32>
    %185 = arith.addf %183, %184 : vector<16x32xf32>
    %186 = arith.truncf %185 : vector<16x32xf32> to vector<16x32xbf16>
    %cst_62 = arith.constant dense<0.000000e+00> : vector<16x128xf32>
    %187 = tpu.matmul %186, %18, %cst_62 {dimension_numbers = #tpu.dot_dimension_numbers<[1], [0], [0], [1], [0, 0, 1, 1], [], []>} : vector<16x32xbf16>, vector<32x128xbf16>, vector<16x128xf32> -> vector<16x128xf32>
    %188 = vector.broadcast %21 : vector<1x128xf32> to vector<16x128xf32>
    %189 = arith.addf %187, %188 : vector<16x128xf32>
    %cst_63 = arith.constant 1.702000e+00 : f32
    %190 = vector.broadcast %cst_63 : f32 to vector<16x128xf32>
    %191 = arith.mulf %190, %189 : vector<16x128xf32>
    %192 = arith.negf %191 : vector<16x128xf32>
    %193 = math.exp %192 : vector<16x128xf32>
    %cst_64 = arith.constant 1.000000e+00 : f32
    %194 = vector.broadcast %cst_64 : f32 to vector<16x128xf32>
    %195 = arith.addf %194, %193 : vector<16x128xf32>
    %196 = arith.divf %194, %195 : vector<16x128xf32>
    %197 = arith.mulf %189, %196 : vector<16x128xf32>
    %198 = arith.truncf %197 : vector<16x128xf32> to vector<16x128xbf16>
    %cst_65 = arith.constant dense<0.000000e+00> : vector<16x32xf32>
    %199 = tpu.matmul %198, %24, %cst_65 {dimension_numbers = #tpu.dot_dimension_numbers<[1], [0], [0], [1], [0, 0, 1, 1], [], []>} : vector<16x128xbf16>, vector<128x32xbf16>, vector<16x32xf32> -> vector<16x32xf32>
    %200 = vector.broadcast %27 : vector<1x32xf32> to vector<16x32xf32>
    %201 = arith.addf %199, %200 : vector<16x32xf32>
    %202 = arith.addf %157, %201 : vector<16x32xf32>
    %c0_66 = arith.constant 0 : index
    %c0_67 = arith.constant 0 : index
    %203 = vector.load %arg25[%c0_66, %c0_67] : memref<16x32xf32, #tpu.memory_space<vmem>>, vector<16x32xf32>
    tpu.vector_store %arg25[%c0_66, %c0_67], %202 {strides = array<i32>} : memref<16x32xf32, #tpu.memory_space<vmem>>, vector<16x32xf32>,
    %c1_i32 = arith.constant 1 : i32
    %204 = arith.cmpi eq, %arg1, %c1_i32 : i32
    %205 = arith.extui %204 : i1 to i32
    %c0_i32_68 = arith.constant 0 : i32
    %206 = arith.cmpi ne, %205, %c0_i32_68 : i32
    scf.if %206 {
      %207 = vector.shape_cast %202 : vector<16x32xf32> to vector<2x8x32xf32>
      %208 = vector.extract_strided_slice %207 {offsets = [0, 0, 0], sizes = [2, 1, 32], strides = [1, 1, 1]} : vector<2x8x32xf32> to vector<2x1x32xf32>
      %209 = vector.shape_cast %208 : vector<2x1x32xf32> to vector<2x32xf32>
      %c0_69 = arith.constant 0 : index
      %c0_70 = arith.constant 0 : index
      %210 = vector.load %arg21[%c0_69, %c0_70] : memref<1x32xf32, #tpu.memory_space<vmem>>, vector<1x32xf32>
      %c0_71 = arith.constant 0 : index
      %c0_72 = arith.constant 0 : index
      %211 = vector.load %arg22[%c0_71, %c0_72] : memref<1x32xf32, #tpu.memory_space<vmem>>, vector<1x32xf32>
      %cst_73 = arith.constant dense<0.000000e+00> : vector<2xf32>
      %212 = vector.multi_reduction <add>, %209, %cst_73 [1] : vector<2x32xf32> to vector<2xf32>
      %213 = vector.shape_cast %212 : vector<2xf32> to vector<2x1xf32>
      %cst_74 = arith.constant 3.200000e+01 : f32
      %214 = vector.broadcast %cst_74 : f32 to vector<2x1xf32>
      %215 = arith.divf %213, %214 : vector<2x1xf32>
      %216 = vector.broadcast %215 : vector<2x1xf32> to vector<2x32xf32>
      %217 = arith.subf %209, %216 : vector<2x32xf32>
      %218 = arith.mulf %217, %217 : vector<2x32xf32>
      %cst_75 = arith.constant dense<0.000000e+00> : vector<2xf32>
      %219 = vector.multi_reduction <add>, %218, %cst_75 [1] : vector<2x32xf32> to vector<2xf32>
      %220 = vector.shape_cast %219 : vector<2xf32> to vector<2x1xf32>
      %cst_76 = arith.constant 3.200000e+01 : f32
      %221 = vector.broadcast %cst_76 : f32 to vector<2x1xf32>
      %222 = arith.divf %220, %221 : vector<2x1xf32>
      %223 = vector.broadcast %215 : vector<2x1xf32> to vector<2x32xf32>
      %224 = arith.subf %209, %223 : vector<2x32xf32>
      %cst_77 = arith.constant 9.99999974E-6 : f32
      %225 = vector.broadcast %cst_77 : f32 to vector<2x1xf32>
      %226 = arith.addf %222, %225 : vector<2x1xf32>
      %227 = math.rsqrt %226 : vector<2x1xf32>
      %228 = vector.broadcast %227 : vector<2x1xf32> to vector<2x32xf32>
      %229 = arith.mulf %224, %228 : vector<2x32xf32>
      %230 = vector.broadcast %210 : vector<1x32xf32> to vector<2x32xf32>
      %231 = arith.mulf %229, %230 : vector<2x32xf32>
      %232 = vector.broadcast %211 : vector<1x32xf32> to vector<2x32xf32>
      %233 = arith.addf %231, %232 : vector<2x32xf32>
      %234 = arith.truncf %233 : vector<2x32xf32> to vector<2x32xbf16>
      %c0_78 = arith.constant 0 : index
      %c0_79 = arith.constant 0 : index
      %235 = vector.load %arg23[%c0_78, %c0_79] : memref<32x16xbf16, #tpu.memory_space<vmem>>, vector<32x16xbf16>
      %cst_80 = arith.constant dense<0.000000e+00> : vector<2x16xf32>
      %236 = tpu.matmul %234, %235, %cst_80 {dimension_numbers = #tpu.dot_dimension_numbers<[1], [0], [0], [1], [0, 0, 1, 1], [], []>} : vector<2x32xbf16>, vector<32x16xbf16>, vector<2x16xf32> -> vector<2x16xf32>
      %c0_81 = arith.constant 0 : index
      %c0_82 = arith.constant 0 : index
      %c0_83 = arith.constant 0 : index
      %237 = vector.load %arg24[%c0_81, %c0_82, %c0_83] : memref<1x2x16xf32, #tpu.memory_space<vmem>>, vector<1x2x16xf32>
      %238 = vector.shape_cast %237 : vector<1x2x16xf32> to vector<2x16xf32>
      %239 = vector.shape_cast %236 : vector<2x16xf32> to vector<1x2x16xf32>
      tpu.vector_store %arg24[%c0_81, %c0_82, %c0_83], %239 {strides = array<i32>} : memref<1x2x16xf32, #tpu.memory_space<vmem>>, vector<1x2x16xf32>,
    } else {
    }
    return
  }
  func.func @transform_0(%arg0: i32, %arg1: i32) -> (i32, i32, i32) {
    %c0_i32 = arith.constant 0 : i32
    %c0_i32_0 = arith.constant 0 : i32
    %c0_i32_1 = arith.constant 0 : i32
    return %arg0, %c0_i32, %c0_i32_0 : i32, i32, i32
  }
  func.func @transform_1(%arg0: i32, %arg1: i32) -> (i32, i32) {
    %c0_i32 = arith.constant 0 : i32
    %c0_i32_0 = arith.constant 0 : i32
    %c0_i32_1 = arith.constant 0 : i32
    return %c0_i32, %c0_i32_0 : i32, i32
  }
  func.func @transform_2(%arg0: i32, %arg1: i32) -> (i32, i32) {
    %c0_i32 = arith.constant 0 : i32
    %c0_i32_0 = arith.constant 0 : i32
    %c0_i32_1 = arith.constant 0 : i32
    return %c0_i32, %c0_i32_0 : i32, i32
  }
  func.func @transform_3(%arg0: i32, %arg1: i32) -> (i32, i32) {
    %c0_i32 = arith.constant 0 : i32
    %c0_i32_0 = arith.constant 0 : i32
    %c0_i32_1 = arith.constant 0 : i32
    return %c0_i32, %c0_i32_0 : i32, i32
  }
  func.func @transform_4(%arg0: i32, %arg1: i32) -> (i32, i32) {
    %c0_i32 = arith.constant 0 : i32
    %c0_i32_0 = arith.constant 0 : i32
    %c0_i32_1 = arith.constant 0 : i32
    return %c0_i32, %c0_i32_0 : i32, i32
  }
  func.func @transform_5(%arg0: i32, %arg1: i32) -> (i32, i32) {
    %c0_i32 = arith.constant 0 : i32
    %c0_i32_0 = arith.constant 0 : i32
    %c0_i32_1 = arith.constant 0 : i32
    return %c0_i32, %c0_i32_0 : i32, i32
  }
  func.func @transform_6(%arg0: i32, %arg1: i32) -> (i32, i32) {
    %c0_i32 = arith.constant 0 : i32
    %c0_i32_0 = arith.constant 0 : i32
    %c0_i32_1 = arith.constant 0 : i32
    return %c0_i32, %c0_i32_0 : i32, i32
  }
  func.func @transform_7(%arg0: i32, %arg1: i32) -> (i32, i32, i32) {
    %c0_i32 = arith.constant 0 : i32
    %c0_i32_0 = arith.constant 0 : i32
    %c0_i32_1 = arith.constant 0 : i32
    %c0_i32_2 = arith.constant 0 : i32
    return %c0_i32, %c0_i32_0, %c0_i32_1 : i32, i32, i32
  }
  func.func @transform_8(%arg0: i32, %arg1: i32) -> (i32, i32, i32) {
    %c0_i32 = arith.constant 0 : i32
    %c0_i32_0 = arith.constant 0 : i32
    %c0_i32_1 = arith.constant 0 : i32
    %c0_i32_2 = arith.constant 0 : i32
    return %c0_i32, %c0_i32_0, %c0_i32_1 : i32, i32, i32
  }
  func.func @transform_9(%arg0: i32, %arg1: i32) -> (i32, i32, i32) {
    %c0_i32 = arith.constant 0 : i32
    %c0_i32_0 = arith.constant 0 : i32
    %c0_i32_1 = arith.constant 0 : i32
    %c0_i32_2 = arith.constant 0 : i32
    return %c0_i32, %c0_i32_0, %c0_i32_1 : i32, i32, i32
  }
  func.func @transform_10(%arg0: i32, %arg1: i32) -> (i32, i32, i32) {
    %c0_i32 = arith.constant 0 : i32
    %c0_i32_0 = arith.constant 0 : i32
    %c0_i32_1 = arith.constant 0 : i32
    %c0_i32_2 = arith.constant 0 : i32
    return %c0_i32, %c0_i32_0, %c0_i32_1 : i32, i32, i32
  }
  func.func @transform_11(%arg0: i32, %arg1: i32) -> (i32, i32, i32) {
    %c0_i32 = arith.constant 0 : i32
    %c0_i32_0 = arith.constant 0 : i32
    %c0_i32_1 = arith.constant 0 : i32
    %c0_i32_2 = arith.constant 0 : i32
    return %c0_i32, %c0_i32_0, %c0_i32_1 : i32, i32, i32
  }
  func.func @transform_12(%arg0: i32, %arg1: i32) -> (i32, i32, i32) {
    %c0_i32 = arith.constant 0 : i32
    %c0_i32_0 = arith.constant 0 : i32
    %c0_i32_1 = arith.constant 0 : i32
    %c0_i32_2 = arith.constant 0 : i32
    return %c0_i32, %c0_i32_0, %c0_i32_1 : i32, i32, i32
  }
  func.func @transform_13(%arg0: i32, %arg1: i32) -> (i32, i32, i32) {
    %c0_i32 = arith.constant 0 : i32
    %c0_i32_0 = arith.constant 0 : i32
    %c0_i32_1 = arith.constant 0 : i32
    %c0_i32_2 = arith.constant 0 : i32
    return %c0_i32, %c0_i32_0, %c0_i32_1 : i32, i32, i32
  }
  func.func @transform_14(%arg0: i32, %arg1: i32) -> (i32, i32, i32) {
    %c0_i32 = arith.constant 0 : i32
    %c0_i32_0 = arith.constant 0 : i32
    %c0_i32_1 = arith.constant 0 : i32
    %c0_i32_2 = arith.constant 0 : i32
    return %c0_i32, %c0_i32_0, %c0_i32_1 : i32, i32, i32
  }
  func.func @transform_15(%arg0: i32, %arg1: i32) -> (i32, i32, i32) {
    %c0_i32 = arith.constant 0 : i32
    %c0_i32_0 = arith.constant 0 : i32
    %c0_i32_1 = arith.constant 0 : i32
    %c0_i32_2 = arith.constant 0 : i32
    return %c0_i32, %c0_i32_0, %c0_i32_1 : i32, i32, i32
  }
  func.func @transform_16(%arg0: i32, %arg1: i32) -> (i32, i32, i32) {
    %c0_i32 = arith.constant 0 : i32
    %c0_i32_0 = arith.constant 0 : i32
    %c0_i32_1 = arith.constant 0 : i32
    %c0_i32_2 = arith.constant 0 : i32
    return %c0_i32, %c0_i32_0, %c0_i32_1 : i32, i32, i32
  }
  func.func @transform_17(%arg0: i32, %arg1: i32) -> (i32, i32, i32) {
    %c0_i32 = arith.constant 0 : i32
    %c0_i32_0 = arith.constant 0 : i32
    %c0_i32_1 = arith.constant 0 : i32
    %c0_i32_2 = arith.constant 0 : i32
    return %c0_i32, %c0_i32_0, %c0_i32_1 : i32, i32, i32
  }
  func.func @transform_18(%arg0: i32, %arg1: i32) -> (i32, i32, i32) {
    %c0_i32 = arith.constant 0 : i32
    %c0_i32_0 = arith.constant 0 : i32
    %c0_i32_1 = arith.constant 0 : i32
    %c0_i32_2 = arith.constant 0 : i32
    return %c0_i32, %c0_i32_0, %c0_i32_1 : i32, i32, i32
  }
  func.func @transform_19(%arg0: i32, %arg1: i32) -> (i32, i32) {
    %c0_i32 = arith.constant 0 : i32
    %c0_i32_0 = arith.constant 0 : i32
    %c0_i32_1 = arith.constant 0 : i32
    return %c0_i32, %c0_i32_0 : i32, i32
  }
  func.func @transform_20(%arg0: i32, %arg1: i32) -> (i32, i32) {
    %c0_i32 = arith.constant 0 : i32
    %c0_i32_0 = arith.constant 0 : i32
    %c0_i32_1 = arith.constant 0 : i32
    return %c0_i32, %c0_i32_0 : i32, i32
  }
  func.func @transform_21(%arg0: i32, %arg1: i32) -> (i32, i32) {
    %c0_i32 = arith.constant 0 : i32
    %c0_i32_0 = arith.constant 0 : i32
    %c0_i32_1 = arith.constant 0 : i32
    return %c0_i32, %c0_i32_0 : i32, i32
  }
  func.func @transform_22(%arg0: i32, %arg1: i32) -> (i32, i32, i32) {
    %c0_i32 = arith.constant 0 : i32
    %c0_i32_0 = arith.constant 0 : i32
    %c0_i32_1 = arith.constant 0 : i32
    return %arg0, %c0_i32, %c0_i32_0 : i32, i32, i32
  }
}

</mosaic_0001>

<bundles_post_ra>
// kernel: encode_image.1
= control target key start
LH: loop header
LB: loop body
LE: loop exit
PB: predicated region body
PF: predicated region fallthrough
CT: control target
= control target key end

     0   :  { %s2958_s0 = inlined_call_operand.vmem [shape: bf16[2,8,192], index: 0, kind: input, shape index: {}]   ;;  %s2959_s1 = inlined_call_operand.vmem [shape: bf16[192,32], index: 1, kind: input, shape index: {}]   ;;  %s2960_s2 = inlined_call_operand.vmem [shape: f32[16,32], index: 2, kind: input, shape index: {}]   ;;  %s2961_s3 = inlined_call_operand.vmem [shape: f32[1,32], index: 3, kind: input, shape index: {}]   ;;  %s2962_s4 = inlined_call_operand.vmem [shape: f32[1,32], index: 4, kind: input, shape index: {}]   ;;  %s2963_s5 = inlined_call_operand.vmem [shape: f32[16,16], index: 5, kind: input, shape index: {}]   ;;  %s2964_s6 = inlined_call_operand.vmem [shape: bf16[4,32], index: 6, kind: input, shape index: {}]   ;;  %s2965_s7 = inlined_call_operand.vmem [shape: f32[2,1,32], index: 7, kind: input, shape index: {}]   ;;  %s2966_s8 = inlined_call_operand.vmem [shape: f32[2,1,32], index: 8, kind: input, shape index: {}]   ;;  %s2967_s9 = inlined_call_operand.vmem [shape: bf16[2,32,96], index: 9, kind: input, shape index: {}]   ;;  %s2968_s10 = inlined_call_operand.vmem [shape: f32[2,1,96], index: 10, kind: input, shape index: {}]   ;;  %s2969_s11 = inlined_call_operand.vmem [shape: bf16[2,32,32], index: 11, kind: input, shape index: {}]   ;;  %s2970_s12 = inlined_call_operand.vmem [shape: f32[2,1,32], index: 12, kind: input, shape index: {}]   ;;  %s2971_s13 = inlined_call_operand.vmem [shape: f32[2,1,32], index: 13, kind: input, shape index: {}]   ;;  %s2972_s14 = inlined_call_operand.vmem [shape: f32[2,1,32], index: 14, kind: input, shape index: {}]   ;;  %s2973_s15 = inlined_call_operand.vmem [shape: bf16[2,32,128], index: 15, kind: input, shape index: {}]   ;;  %s2974_s16 = inlined_call_operand.vmem [shape: f32[2,1,128], index: 16, kind: input, shape index: {}]   ;;  %s2975_s17 = inlined_call_operand.vmem [shape: bf16[2,128,32], index: 17, kind: input, shape index: {}]   ;;  %s2976_s18 = inlined_call_operand.vmem [shape: f32[2,1,32], index: 18, kind: input, shape index: {}]   ;;  %s2977_s19 = inlined_call_operand.vmem [shape: f32[1,32], index: 19, kind: input, shape index: {}]   ;;  %s2978_s20 = inlined_call_operand.vmem [shape: f32[1,32], index: 20, kind: input, shape index: {}]   ;;  %s2979_s21 = inlined_call_operand.vmem [shape: bf16[32,16], index: 21, kind: input, shape index: {}]   ;;  %s2980_s22 = inlined_call_operand.hbm [shape: f32[1,2,16], index: 22, kind: output, shape index: {}]  }
   0x1   :  { %2986 = sst [smem:[#allocation6_spill]] %s2958_s0 }
   0x2   :  { %2987 = sst [smem:[#allocation7_spill]] %s2959_s1 }
   0x3   :  { %2988 = sst [smem:[#allocation8_spill]] %s2960_s2 }
   0x4   :  { %2989 = sst [smem:[#allocation9_spill]] %s2961_s3 }
   0x5   :  { %2990 = sst [smem:[#allocation10_spill]] %s2962_s4 }
   0x6   :  { %2991 = sst [smem:[#allocation11_spill]] %s2963_s5 }
   0x7   :  { %2992 = sst [smem:[#allocation12_spill]] %s2964_s6 }
   0x8   :  { %27 = vsyncpa [#allocation4], 0  ;;  %s2603_s3 = smov 0   ;;  %s2605_s28 = smov 0  }
   0x9   :  { %s2607_s29 = smov 0  }
   0xa LB: > { %s42_s4 = sadd.s32 1, %s2474_s28  ;;  %p2094_p1 = scmp.ge.s32.totalorder %s2478_s29, 1  ;;  %s2478_s29 = sphi %s2607_s29, %s33_s29   ;;  %s2474_s28 = sphi %s2605_s28, %s3003_s28   ;;  %s2470_s3 = sphi %s2603_s3, %s3002_s3  }
   0xb   : > { %p43_p0 = scmp.ge.s32.totalorder %s42_s4, 2  ;;  %p627_p2 = scmp.lt.s32.totalorder %s2478_s29, 3 }
   0xd   : > { %s3005_s4 = smov (%p43_p0, %s42_s4), 0  ;;  %p628_p3 = pnand %p2094_p1, %p627_p2 }
   0xe   : > { %p2095_p4 = scmp.ne.s32.totalorder (!%p628_p3), %s2470_s3, 0 }
   0xf   : > { %631 = sbr.rel (%p628_p3) target bundleno = 3999 (0xf9f), region = 108 }
  0x14   : > { %696 = sbr.rel (%p2095_p4) target bundleno = 582 (0x246), region = 112  ;;  %s2993_s1 = sld [smem:[#allocation7_spill]] (!%p2095_p4) }
  0x15   : > { %s2994_s23 = sld [smem:[#allocation6_spill]] (!%p2095_p4) }
  0x16   : > { %s2995_s30 = sld [smem:[#allocation8_spill]] (!%p2095_p4) }
  0x17   : > { %s2996_s5 = sld [smem:[#allocation9_spill]] (!%p2095_p4) }
  0x18   : > { %s2997_s25 = sld [smem:[#allocation10_spill]] (!%p2095_p4) }
  0x19   : > { %v2480_v1 = vmov 0   ;;  %vm806_vm0 = vcmask 523264   ;;  %vm853_vm1 = vcmask 261120  }
  0x1a   : > { %v2343_v0 = vld [vmem:[%s2993_s1 + $0x38] sm:$0xff]   ;;  %810 = vmatprep.subr.bf16.mxu0 %v2480_v1  ;;  %v2344_v2 = vld [vmem:[%s2993_s1 + $0x30] sm:$0xff]   ;;  %v2345_v3 = vld [vmem:[%s2993_s1 + $0x28] sm:$0xff]  }
  0x1b   : > { %811 = vmatpush1.bf16.msra.mxu0 %v2343_v0  ;;  %v2346_v4 = vld [vmem:[%s2993_s1 + $0x20] sm:$0xff]   ;;  %v2347_v6 = vld [vmem:[%s2993_s1 + $0x18] sm:$0xff]   ;;  %v2348_v7 = vld [vmem:[%s2993_s1 + $0x10] sm:$0xff]  }
  0x1c   : > { %812 = vmatprep.subr.bf16.mxu0 %v2480_v1  ;;  %v2357_v5 = vld [vmem:[%s2994_s23 + $0x4] ss:$8 sps:$4 sm:$0xff]   ;;  %v2351_v10 = vld [vmem:[%s2993_s1 + $0x58] sm:$0xff]   ;;  %v2352_v11 = vld [vmem:[%s2993_s1 + $0x50] sm:$0xff]  }
  0x1d   : > { %2110 = vmatprep.mubr.msk.bf16.mxu0 %vm806_vm0, %v2357_v5  ;;  %v2349_v8 = vld [vmem:[%s2993_s1 + $0x8] sm:$0xff]   ;;  %v2350_v9 = vld [vmem:[%s2993_s1] sm:$0xff]  }
  0x1e   : > { %v2353_v12 = vld [vmem:[%s2993_s1 + $0x48] sm:$0xff]   ;;  %v2354_v13 = vld [vmem:[%s2993_s1 + $0x40] sm:$0xff]  }
  0x1f   : > { %813 = vmatpush1.bf16.msra.mxu0 %v2344_v2  ;;  %v2355_v14 = vld [vmem:[%s2994_s23] ss:$8 sps:$4 sm:$0xff]  }
  0x20   : > { %814 = vmatprep.subr.bf16.mxu0 %v2480_v1  ;;  %v723_v15 = vld [vmem:[%s2995_s30] sm:$0xff]  ;;  %v724_v19 = vld [vmem:[%s2995_s30 + $0x8] sm:$0xff] }
  0x21   : > { %v2111_v42 = vld [vmem:[%s2996_s5] ss:$0 sm:$0xff] }
  0x22   : > { %v2112_v44 = vld [vmem:[%s2997_s25] ss:$0 sm:$0xff] }
  0x23   : > { %815 = vmatpush1.bf16.msra.mxu0 %v2345_v3 }
  0x24   : > { %816 = vmatprep.subr.bf16.mxu0 %v2480_v1 }
  0x27   : > { %817 = vmatpush1.bf16.msra.mxu0 %v2346_v4 }
  0x28   : > { %818 = vmatprep.subr.bf16.mxu0 %v2480_v1 }
  0x2b   : > { %819 = vmatpush1.bf16.msra.mxu0 %v2347_v6 }
  0x2c   : > { %820 = vmatprep.subr.bf16.mxu0 %v2480_v1 }
  0x2f   : > { %821 = vmatpush1.bf16.msra.mxu0 %v2348_v7 }
  0x30   : > { %822 = vmatprep.subr.bf16.mxu0 %v2480_v1 }
  0x33   : > { %823 = vmatpush1.bf16.msra.mxu0 %v2349_v8 }
  0x34   : > { %824 = vmatprep.subr.bf16.mxu0 %v2480_v1 }
  0x37   : > { %825 = vmatpush1.bf16.msra.mxu0 %v2350_v9 }
  0x38   : > { %834 = vmatprep.subr.bf16.mxu0 %v2480_v1 }
  0x3b   : > { %835 = vmatpush2.bf16.msra.mxu0 %v2351_v10 }
  0x3c   : > { %836 = vmatprep.subr.bf16.mxu0 %v2480_v1 }
  0x3f   : > { %837 = vmatpush2.bf16.msra.mxu0 %v2352_v11 }
  0x40   : > { %838 = vmatprep.subr.bf16.mxu0 %v2480_v1 }
  0x43   : > { %839 = vmatpush2.bf16.msra.mxu0 %v2353_v12 }
  0x44   : > { %840 = vmatprep.subr.bf16.mxu0 %v2480_v1 }
  0x47   : > { %841 = vmatpush2.bf16.msra.mxu0 %v2354_v13 }
  0x4a   : > { %843 = vmatmul.mubr.bf16.vlgmr.msra.gmra.mxu0 %v2355_v14 }
 0x10a   : > { %v844_v16 = vpop.f32.mrf.mxu0 }
 0x10b   : > { %v845_v17 = vadd.f32 %v844_v16, %v723_v15 }
 0x10c   : > { %v846_v18 = vpop.f32.mrf.mxu0 }
 0x10d   : > { %v854_v20 = vsel %vm853_vm1, %v845_v17, 0.0 }
 0x10e   : > { %v847_v21 = vpop.f32.mrf.mxu0  ;;  %855 = vadd.xlane.f32.xlu0 %v854_v20 }
 0x10f   : > { %v848_v22 = vadd.f32 %v847_v21, %v724_v19 }
 0x110   : > { %v849_v23 = vpop.f32.mrf.mxu0 }
 0x111   : > { %v857_v24 = vsel %vm853_vm1, %v848_v22, 0.0 }
 0x112   : > { %858 = vadd.xlane.f32.xlu0 %v857_v24 }
 0x197   : > { %v856_v25 = vpop.xlane.xlu0 %855 }
 0x198   : > { %v861_v26 = vmul.f32 0.03125, %v856_v25 }
 0x19a   : > { %v863_v27 = vsub.f32 %v845_v17, %v861_v26 }
 0x19b   : > { %v859_v28 = vpop.xlane.xlu0 %858 }
 0x19c   : > { %v862_v29 = vmul.f32 0.03125, %v859_v28  ;;  %v865_v30 = vmul.f32 %v863_v27, %v863_v27 }
 0x19e   : > { %v864_v31 = vsub.f32 %v848_v22, %v862_v29  ;;  %v867_v32 = vsel %vm853_vm1, %v865_v30, 0.0 }
 0x19f   : > { %868 = vadd.xlane.f32.xlu1 %v867_v32 }
 0x1a0   : > { %v866_v33 = vmul.f32 %v864_v31, %v864_v31 }
 0x1a2   : > { %v870_v34 = vsel %vm853_vm1, %v866_v33, 0.0 }
 0x1a3   : > { %871 = vadd.xlane.f32.xlu1 %v870_v34 }
 0x228   : > { %v869_v35 = vpop.xlane.xlu1 %868 }
 0x229   : > { %v873_v36 = vmul.f32 0.03125, %v869_v35 }
 0x22b   : > { %v875_v37 = vadd.f32 1e-05, %v873_v36 }
 0x22c   : > { %v872_v38 = vpop.xlane.xlu1 %871 }
 0x22d   : > { %2358 = vrsqrt.f32 %v875_v37  ;;  %v874_v39 = vmul.f32 0.03125, %v872_v38 }
 0x22f   : > { %v876_v40 = vadd.f32 1e-05, %v874_v39 }
 0x231   : > { %2360 = vrsqrt.f32 %v876_v40 }
 0x23a   : > { %v2359_v41 = vpop.eup %2358 }
 0x23b   : > { %v879_v43 = vmul.f32 %v2359_v41, %v863_v27 }
 0x23d   : > { %v887_v45 = vmul.f32 %v2111_v42, %v879_v43 }
 0x23e   : > { %v2361_v46 = vpop.eup %2360 }
 0x23f   : > { %v895_v47 = vadd.f32 %v2112_v44, %v887_v45  ;;  %v880_v48 = vmul.f32 %v2361_v46, %v864_v31 }
 0x241   : > { %897 = vst.msk [vmem:[#allocation2] sm:$0xff] %vm853_vm1, %v895_v47  ;;  %v888_v49 = vmul.f32 %v2111_v42, %v880_v48 }
 0x243   : > { %v896_v50 = vadd.f32 %v2112_v44, %v888_v49 }
 0x245   : > { %898 = vst.msk [vmem:[#allocation2 + $0x8] sm:$0xff] %vm853_vm1, %v896_v50 }
 0x246 PF: > { %vm951_vm2 = vcmask 261120   ;;  %s2164_s26 = sshll.u32 %s2470_s3, 4  ;;  %v2481_v1 = vmov 0.0   ;;  %vm2482_vm3 = vmmov 0   ;;  %s949_s24 = scalar_lea.vmem %s2966_s8, %s2470_s3  ;;  %v1065_v21 = vlaneseq }
 0x247   : > { %2205 = vmatprep.subr.bf16.mxu0 %v2481_v1  ;;  %s903_s0 = scalar_lea.vmem %s2967_s9, %s2164_s26  ;;  %2209 = vmatprep.mubr.msk.bf16.mxu0 %vm2482_vm3, %v2481_v1  ;;  %s2710_s6 = scalar_lea.vmem %s2969_s11, %s2164_s26  ;;  %v2120_v16 = vld [vmem:[%s949_s24] ss:$0 sm:$0xff]  ;;  %vm1124_vm4 = vcmask 130048  }
 0x248   : > { %v2685_v51 = vld [vmem:[#allocation2] sm:$0xff]  ;;  %v2362_v2 = vld [vmem:[%s903_s0 + $0x8] sm:$0xff]   ;;  %2225 = vmatprep.subr.bf16.mxu1 %v2481_v1  ;;  %2227 = vmatprep.mubr.msk.bf16.mxu1 %vm2482_vm3, %v2481_v1  ;;  %s2715_s2 = scalar_lea.vmem %s2973_s15, %s2164_s26  ;;  %s947_s26 = scalar_lea.vmem %s2965_s7, %s2470_s3  ;;  %v1066_v23 = vshrl.u32 %v1065_v21, 7 }
 0x249   : > { %v952_v53 = vsel %vm951_vm2, %v2685_v51, 0.0  ;;  %2206 = vmatpush3.bf16.msra.mxu0 %v2362_v2  ;;  %v2363_v3 = vld [vmem:[%s903_s0] sm:$0xff]   ;;  %s2998_s1 = sld [smem:[#allocation12_spill]]  ;;  %s908_s5 = scalar_lea.vmem %s2968_s10, %s2470_s3 }
 0x24a   : > { %953 = vadd.xlane.f32.xlu0 %v952_v53  ;;  %2207 = vmatprep.subr.bf16.mxu0 %v2481_v1  ;;  %v2119_v12 = vld [vmem:[%s947_s26] ss:$0 sm:$0xff]  ;;  %v1335_v27 = vsub.s32 1, %v1066_v23  ;;  %s2483_s24 = smov 96   ;;  %v1067_v38 = vsub.s32 0, %v1066_v23  ;;  %s916_s25 = scalar_lea.vmem %s2970_s12, %s2470_s3 }
 0x24b   : > { %v2121_v31 = vld [vmem:[%s908_s5] ss:$0 sm:$0xff]  ;;  %s2484_s5 = smov 64   ;;  %s1660_s0 = scalar_lea.vmem %s2971_s13, %s2470_s3 }
 0x24c   : > { %v2687_v52 = vld [vmem:[#allocation2 + $0x8] sm:$0xff]  ;;  %p2154_p5 = scmp.ne.s32.totalorder %s2470_s3, 1 }
 0x24d   : > { %v955_v54 = vsel %vm951_vm2, %v2687_v52, 0.0  ;;  %2208 = vmatpush3.bf16.msra.mxu0 %v2363_v3 }
 0x24e   : > { %956 = vadd.xlane.f32.xlu0 %v955_v54  ;;  %2213 = vmatprep.subr.bf16.mxu0 %v2481_v1 }
 0x24f   : > { %v1061_v22 = vld [vmem:[%s2998_s1] sm:$0x3]  ;;  %s2999_s1 = sld [smem:[#allocation11_spill]] }
 0x250   : > { %v1153_v24 = vshrl.u32 %v1061_v22, 16  ;;  %v1063_v25 = vpack.i.b16 %v1061_v22, %v1061_v22 }
 0x252   : > { %v1154_v26 = vpack.i.b16 %v1153_v24, %v1153_v24  ;;  %v2733_v28 = vrot.slane %v1063_v25, %v1335_v27  ;;  %v2748_v41 = vrot.slane %v1063_v25, %v1067_v38 }
 0x254   : > { %v2735_v29 = vrot.slane %v1154_v26, %v1335_v27  ;;  %v1159_v43 = vrot.slane %v1154_v26, %v1067_v38 }
 0x255   : > { %v2765_v54 = vld [vmem:[%s2999_s1] sm:$0xff] }
 0x2d3   : > { %v954_v55 = vpop.xlane.xlu0 %953 }
 0x2d4   : > { %v959_v56 = vmul.f32 0.03125, %v954_v55 }
 0x2d6   : > { %v961_v57 = vsub.f32 %v2685_v51, %v959_v56 }
 0x2d7   : > { %v957_v58 = vpop.xlane.xlu0 %956 }
 0x2d8   : > { %v960_v59 = vmul.f32 0.03125, %v957_v58  ;;  %v963_v60 = vmul.f32 %v961_v57, %v961_v57 }
 0x2da   : > { %v962_v61 = vsub.f32 %v2687_v52, %v960_v59  ;;  %v965_v62 = vsel %vm951_vm2, %v963_v60, 0.0  ;;  %v2772_v60 = vld [vmem:[%s2999_s1 + $0x8] sm:$0xff] }
 0x2db   : > { %966 = vadd.xlane.f32.xlu1 %v965_v62 }
 0x2dc   : > { %v964_v63 = vmul.f32 %v962_v61, %v962_v61 }
 0x2de   : > { %v968_v0 = vsel %vm951_vm2, %v964_v63, 0.0 }
 0x2df   : > { %969 = vadd.xlane.f32.xlu1 %v968_v0 }
 0x364   : > { %v967_v4 = vpop.xlane.xlu1 %966 }
 0x365   : > { %v971_v5 = vmul.f32 0.03125, %v967_v4 }
 0x367   : > { %v973_v6 = vadd.f32 1e-05, %v971_v5 }
 0x368   : > { %v970_v7 = vpop.xlane.xlu1 %969 }
 0x369   : > { %2376 = vrsqrt.f32 %v973_v6  ;;  %v972_v8 = vmul.f32 0.03125, %v970_v7 }
 0x36b   : > { %v974_v9 = vadd.f32 1e-05, %v972_v8 }
 0x36d   : > { %2378 = vrsqrt.f32 %v974_v9 }
 0x376   : > { %v2377_v10 = vpop.eup %2376 }
 0x377   : > { %v977_v11 = vmul.f32 %v2377_v10, %v961_v57 }
 0x379   : > { %v985_v15 = vmul.f32 %v2119_v12, %v977_v11 }
 0x37a   : > { %v2379_v13 = vpop.eup %2378 }
 0x37b   : > { %v978_v14 = vmul.f32 %v2379_v13, %v962_v61  ;;  %v993_v18 = vadd.f32 %v2120_v16, %v985_v15 }
 0x37d   : > { %v986_v17 = vmul.f32 %v2119_v12, %v978_v14 }
 0x37f   : > { %v994_v19 = vadd.f32 %v2120_v16, %v986_v17 }
 0x381   : > { %v995_v20 = vpack.c.bf16 %v994_v19, %v993_v18 }
 0x383   : > { %2210 = vmatmul.mubr.msk.bf16.vlgmr.msra.gmra.mxu0 %vm951_vm2, %v995_v20 }
 0x384   : > { %2215 = vmatprep.mubr.msk.bf16.mxu0 %vm2482_vm3, %v2481_v1 }
 0x443   : > { %v1051_v30 = vpop.f32.mrf.mxu0 }
 0x444   : > { %v1052_v34 = vadd.f32 %v2121_v31, %v1051_v30 }
 0x445   : > { %v2211_v32 = vpop.f32.mrf.mxu0 }
 0x447   : > { %v1054_v33 = vpop.f32.mrf.mxu0 }
 0x448   : > { %v1055_v35 = vadd.f32 %v2121_v31, %v1054_v33 }
 0x449   : > { %v2212_v36 = vpop.f32.mrf.mxu0 }
 0x44a   : > { %v2741_v37 = vpack.c.bf16 %v1055_v35, %v1052_v34 }
 0x44c   : > { %1071 = vrot.lane.b32.xlu0 %v2741_v37, %s2483_s24  ;;  %v1069_v42 = vmul.bf16 %v2748_v41, %v2741_v37  ;;  %v1160_v44 = vmul.bf16 %v1159_v43, %v2741_v37  ;;  %v1337_v26 = vmul.bf16 %v2733_v28, %v2741_v37  ;;  %v1468_v27 = vmul.bf16 %v2735_v29, %v2741_v37  ;;  %s2167_s24 = sshll.u32 %s2470_s3, 6 }
 0x44d   : > { %s928_s26 = scalar_lea.vmem %s2975_s17, %s2167_s24 }
 0x4be   : > { %v1072_v39 = vpop.permute.xlu0 %1071 }
 0x4bf   : > { %v2745_v40 = vsel %vm951_vm2, %v1072_v39, 0 }
 0x4c0   : > { %2214 = vmatpush3.bf16.xpose.msra.mxu0 %v2745_v40 }
 0x4c1   : > { %2219 = vmatprep.subr.bf16.mxu0 %v2481_v1 }
 0x4c7   : > { %2216 = vmatmul.mubr.msk.bf16.vlgmr.msra.gmra.mxu0 %vm951_vm2, %v1069_v42 }
 0x4c8   : > { %2220 = vmatpush3.bf16.xpose.msra.mxu0 %v2745_v40  ;;  %2221 = vmatprep.mubr.msk.bf16.mxu0 %vm2482_vm3, %v2481_v1 }
 0x4c9   : > { %2231 = vmatprep.subr.bf16.mxu0 %v2481_v1 }
 0x4cf   : > { %2222 = vmatmul.mubr.msk.bf16.vlgmr.msra.gmra.mxu0 %vm951_vm2, %v1160_v44 }
 0x4d0   : > { %2233 = vmatprep.mubr.msk.bf16.mxu0 %vm2482_vm3, %v2481_v1 }
 0x587   : > { %v1113_v45 = vpop.f32.mrf.mxu0 }
 0x588   : > { %v1120_v7 = vmul.f32 0.35355338, %v1113_v45 }
 0x589   : > { %v2217_v46 = vpop.f32.mrf.mxu0 }
 0x58a   : > { %v1122_v12 = vadd.f32 %v1120_v7, %v2765_v54 }
 0x58b   : > { %v1116_v47 = vpop.f32.mrf.mxu0 }
 0x58c   : > { %v1121_v10 = vmul.f32 0.35355338, %v1116_v47  ;;  %v1125_v13 = vsel %vm1124_vm4, %v1122_v12, -inf }
 0x58d   : > { %v2218_v48 = vpop.f32.mrf.mxu0 }
 0x58e   : > { %v2782_v14 = vadd.f32 %v1121_v10, %v2772_v60 }
 0x58f   : > { %v1198_v49 = vpop.f32.mrf.mxu0 }
 0x590   : > { %v1205_v50 = vmul.f32 0.35355338, %v1198_v49  ;;  %v1128_v15 = vsel %vm1124_vm4, %v2782_v14, -inf }
 0x591   : > { %v2223_v53 = vpop.f32.mrf.mxu0 }
 0x592   : > { %v1207_v55 = vadd.f32 %v1205_v50, %v2765_v54 }
 0x593   : > { %v1201_v56 = vpop.f32.mrf.mxu0 }
 0x594   : > { %v1206_v57 = vmul.f32 0.35355338, %v1201_v56  ;;  %v1209_v58 = vsel %vm1124_vm4, %v1207_v55, -inf }
 0x595   : > { %1210 = vmax.xlane.f32.xlu1 %v1209_v58  ;;  %v2224_v59 = vpop.f32.mrf.mxu0 }
 0x596   : > { %v1208_v61 = vadd.f32 %v1206_v57, %v2772_v60 }
 0x598   : > { %v1212_v62 = vsel %vm1124_vm4, %v1208_v61, -inf }
 0x599   : > { %1213 = vmax.xlane.f32.xlu1 %v1212_v62 }
 0x5aa   : > { %1233 = vrot.lane.b32.xlu1 %v1159_v43, %s2484_s5 }
 0x61e   : > { %v1211_v63 = vpop.xlane.xlu1 %1210 }
 0x61f   : > { %v1215_v0 = vsub.f32 %v1207_v55, %v1211_v63 }
 0x621   : > { %v1217_v2 = vmul.f32 1.442695, %v1215_v0 }
 0x622   : > { %v1214_v3 = vpop.xlane.xlu1 %1213 }
 0x623   : > { %2380 = vpow2.f32 %v1217_v2  ;;  %v1216_v4 = vsub.f32 %v1208_v61, %v1214_v3 }
 0x625   : > { %v1219_v5 = vmul.f32 1.442695, %v1216_v4 }
 0x626   : > { %v1234_v16 = vpop.permute.xlu1 %1233 }
 0x627   : > { %2382 = vpow2.f32 %v1219_v5  ;;  %v1236_v17 = vmul.bf16 %v1234_v16, %v2741_v37 }
 0x630   : > { %v2381_v6 = vpop.eup %2380 }
 0x631   : > { %v1221_v8 = vsel %vm1124_vm4, %v2381_v6, 0.0 }
 0x632   : > { %1222 = vadd.xlane.f32.xlu0 %v1221_v8 }
 0x634   : > { %v2383_v9 = vpop.eup %2382 }
 0x635   : > { %v1224_v11 = vsel %vm1124_vm4, %v2383_v9, 0.0 }
 0x636   : > { %1225 = vadd.xlane.f32.xlu1 %v1224_v11 }
 0x63a   : > { %1126 = vmax.xlane.f32.xlu1 %v1125_v13 }
 0x63e   : > { %1129 = vmax.xlane.f32.xlu1 %v1128_v15 }
 0x648   : > { %1238 = vrot.lane.b32.xlu0 %v1236_v17, %s2484_s5 }
 0x6bb   : > { %v1223_v18 = vpop.xlane.xlu0 %1222 }
 0x6bc   : > { %2384 = vrcp.f32 %v1223_v18 }
 0x6bf   : > { %v1239_v19 = vpop.permute.xlu0 %1238  ;;  %v1226_v20 = vpop.xlane.xlu1 %1225 }
 0x6c0   : > { %2386 = vrcp.f32 %v1226_v20  ;;  %2226 = vmatpush3.bf16.msra.mxu1 %v1239_v19 }
 0x6c1   : > { %2237 = vmatprep.subr.bf16.mxu1 %v2481_v1 }
 0x6c3   : > { %v1127_v30 = vpop.xlane.xlu1 %1126 }
 0x6c4   : > { %v1131_v32 = vsub.f32 %v1122_v12, %v1127_v30 }
 0x6c6   : > { %v1133_v35 = vmul.f32 1.442695, %v1131_v32 }
 0x6c8   : > { %2388 = vpow2.f32 %v1133_v35 }
 0x6c9   : > { %v2385_v21 = vpop.eup %2384 }
 0x6ca   : > { %v1228_v23 = vmul.f32 %v2385_v21, %v2381_v6 }
 0x6cd   : > { %v2387_v22 = vpop.eup %2386 }
 0x6ce   : > { %v1230_v24 = vmul.f32 %v2387_v22, %v2383_v9 }
 0x6d0   : > { %v1231_v25 = vpack.c.bf16 %v1230_v24, %v1228_v23 }
 0x6d2   : > { %2228 = vmatmul.mubr.msk.bf16.vlgmr.msra.gmra.mxu1 %vm1124_vm4, %v1231_v25 }
 0x6d3   : > { %2238 = vmatpush3.bf16.xpose.msra.mxu1 %v2745_v40  ;;  %2239 = vmatprep.mubr.msk.bf16.mxu1 %vm2482_vm3, %v2481_v1 }
 0x6d4   : > { %2249 = vmatprep.subr.bf16.mxu1 %v2481_v1 }
 0x6d5   : > { %v2816_v59 = vpop.eup %2388 }
 0x6d6   : > { %v1137_v0 = vsel %vm1124_vm4, %v2816_v59, 0.0 }
 0x6da   : > { %2240 = vmatmul.mubr.msk.bf16.vlgmr.msra.gmra.mxu1 %vm951_vm2, %v1337_v26 }
 0x6db   : > { %2250 = vmatpush3.bf16.xpose.msra.mxu1 %v2745_v40  ;;  %2251 = vmatprep.mubr.msk.bf16.mxu1 %vm2482_vm3, %v2481_v1 }
 0x6dc   : > { %2261 = vmatprep.subr.bf16.mxu1 %v2481_v1 }
 0x6e2   : > { %2252 = vmatmul.mubr.msk.bf16.vlgmr.msra.gmra.mxu1 %vm951_vm2, %v1468_v27 }
 0x6e3   : > { %2265 = vmatprep.mubr.msk.bf16.mxu1 %vm2482_vm3, %v2481_v1 }
 0x792   : > { %v2806_v31 = vpop.f32.mrf.mxu1 }
 0x794   : > { %v2229_v33 = vpop.f32.mrf.mxu1 }
 0x796   : > { %v2808_v34 = vpop.f32.mrf.mxu1 }
 0x798   : > { %v2230_v36 = vpop.f32.mrf.mxu1 }
 0x79a   : > { %v1375_v38 = vpop.f32.mrf.mxu1 }
 0x79b   : > { %v1382_v39 = vmul.f32 0.35355338, %v1375_v38 }
 0x79c   : > { %v2241_v40 = vpop.f32.mrf.mxu1 }
 0x79d   : > { %v1384_v42 = vadd.f32 %v1382_v39, %v2765_v54 }
 0x79e   : > { %v1378_v43 = vpop.f32.mrf.mxu1 }
 0x79f   : > { %v1383_v44 = vmul.f32 0.35355338, %v1378_v43  ;;  %v1386_v45 = vsel %vm1124_vm4, %v1384_v42, -inf }
 0x7a0   : > { %1387 = vmax.xlane.f32.xlu1 %v1386_v45  ;;  %v2242_v46 = vpop.f32.mrf.mxu1 }
 0x7a1   : > { %v1385_v47 = vadd.f32 %v1383_v44, %v2772_v60 }
 0x7a2   : > { %v1506_v48 = vpop.f32.mrf.mxu1 }
 0x7a3   : > { %v1513_v49 = vmul.f32 0.35355338, %v1506_v48  ;;  %v1389_v50 = vsel %vm1124_vm4, %v1385_v47, -inf }
 0x7a4   : > { %1390 = vmax.xlane.f32.xlu1 %v1389_v50  ;;  %v2253_v53 = vpop.f32.mrf.mxu1 }
 0x7a5   : > { %v1515_v55 = vadd.f32 %v1513_v49, %v2765_v54  ;;  %v1130_v54 = vpop.xlane.xlu1 %1129 }
 0x7a6   : > { %v1509_v56 = vpop.f32.mrf.mxu1  ;;  %v1132_v2 = vsub.f32 %v2782_v14, %v1130_v54 }
 0x7a7   : > { %v1514_v57 = vmul.f32 0.35355338, %v1509_v56  ;;  %v1517_v58 = vsel %vm1124_vm4, %v1515_v55, -inf }
 0x7a8   : > { %1518 = vmax.xlane.f32.xlu0 %v1517_v58  ;;  %v2254_v61 = vpop.f32.mrf.mxu1 }
 0x7a9   : > { %v1516_v62 = vadd.f32 %v1514_v57, %v2772_v60  ;;  %v1135_v60 = vmul.f32 1.442695, %v1132_v2  ;;  %v2364_v61 = vld [vmem:[%s2710_s6 + $0x8] sm:$0xff]  }
 0x7aa   : > { %2262 = vmatpush3.bf16.msra.mxu1 %v2364_v61  ;;  %v2370_v61 = vld [vmem:[%s928_s26 + $0x28] sm:$0xff]  }
 0x7ab   : > { %v1520_v63 = vsel %vm1124_vm4, %v1516_v62, -inf  ;;  %2390 = vpow2.f32 %v1135_v60  ;;  %2263 = vmatprep.subr.bf16.mxu1 %v2481_v1 }
 0x7ac   : > { %1521 = vmax.xlane.f32.xlu1 %v1520_v63  ;;  %1138 = vadd.xlane.f32.xlu0 %v1137_v0 }
 0x7b8   : > { %v2391_v3 = vpop.eup %2390 }
 0x7b9   : > { %v1140_v4 = vsel %vm1124_vm4, %v2391_v3, 0.0 }
 0x7bd   : > { %1149 = vrot.lane.b32.xlu1 %v2748_v41, %s2484_s5 }
 0x7c1   : > { %1410 = vrot.lane.b32.xlu1 %v2733_v28, %s2484_s5 }
 0x7c5   : > { %1541 = vrot.lane.b32.xlu1 %v2735_v29, %s2484_s5 }
 0x7e9   : > { %1141 = vadd.xlane.f32.xlu1 %v1140_v4 }
 0x829   : > { %v1388_v5 = vpop.xlane.xlu1 %1387 }
 0x82a   : > { %v1392_v9 = vsub.f32 %v1384_v42, %v1388_v5 }
 0x82c   : > { %v1394_v10 = vmul.f32 1.442695, %v1392_v9 }
 0x82d   : > { %v1391_v6 = vpop.xlane.xlu1 %1390 }
 0x82e   : > { %v1393_v11 = vsub.f32 %v1385_v47, %v1391_v6  ;;  %2392 = vpow2.f32 %v1394_v10 }
 0x830   : > { %v1396_v13 = vmul.f32 1.442695, %v1393_v11 }
 0x831   : > { %v1519_v12 = vpop.xlane.xlu0 %1518 }
 0x832   : > { %v1523_v14 = vsub.f32 %v1515_v55, %v1519_v12  ;;  %2394 = vpow2.f32 %v1396_v13 }
 0x834   : > { %v1525_v15 = vmul.f32 1.442695, %v1523_v14 }
 0x835   : > { %v1522_v7 = vpop.xlane.xlu1 %1521  ;;  %v1139_v32 = vpop.xlane.xlu0 %1138 }
 0x836   : > { %v1524_v16 = vsub.f32 %v1516_v62, %v1522_v7  ;;  %2396 = vpow2.f32 %v1525_v15  ;;  %v2365_v62 = vld [vmem:[%s2710_s6] sm:$0xff]   ;;  %s1662_s6 = scalar_lea.vmem %s2972_s14, %s2470_s3 }
 0x837   : > { %2264 = vmatpush3.bf16.msra.mxu1 %v2365_v62  ;;  %v2371_v62 = vld [vmem:[%s928_s26 + $0x20] sm:$0xff]  }
 0x838   : > { %v1527_v17 = vmul.f32 1.442695, %v1524_v16  ;;  %2277 = vmatprep.subr.bf16.mxu1 %v2481_v1 }
 0x839   : > { %v1150_v8 = vpop.permute.xlu1 %1149 }
 0x83a   : > { %v1152_v41 = vmul.bf16 %v1150_v8, %v2741_v37  ;;  %2398 = vpow2.f32 %v1527_v17 }
 0x83b   : > { %v2393_v18 = vpop.eup %2392 }
 0x83c   : > { %1286 = vrot.lane.b32.xlu0 %v1152_v41, %s2484_s5  ;;  %v1398_v19 = vsel %vm1124_vm4, %v2393_v18, 0.0 }
 0x83d   : > { %v1411_v28 = vpop.permute.xlu1 %1410 }
 0x83e   : > { %v1413_v29 = vmul.bf16 %v1411_v28, %v2741_v37 }
 0x83f   : > { %v2395_v20 = vpop.eup %2394 }
 0x840   : > { %1415 = vrot.lane.b32.xlu1 %v1413_v29, %s2484_s5  ;;  %v1401_v21 = vsel %vm1124_vm4, %v2395_v20, 0.0 }
 0x841   : > { %v1542_v26 = vpop.permute.xlu1 %1541 }
 0x842   : > { %v1544_v27 = vmul.bf16 %v1542_v26, %v2741_v37 }
 0x843   : > { %v2397_v22 = vpop.eup %2396 }
 0x844   : > { %v1529_v23 = vsel %vm1124_vm4, %v2397_v22, 0.0 }
 0x847   : > { %v2399_v24 = vpop.eup %2398 }
 0x848   : > { %v1532_v25 = vsel %vm1124_vm4, %v2399_v24, 0.0 }
 0x85b   : > { %1399 = vadd.xlane.f32.xlu0 %v1398_v19 }
 0x85f   : > { %1402 = vadd.xlane.f32.xlu0 %v1401_v21 }
 0x863   : > { %1530 = vadd.xlane.f32.xlu0 %v1529_v23 }
 0x867   : > { %1533 = vadd.xlane.f32.xlu0 %v1532_v25 }
 0x872   : > { %v1142_v30 = vpop.xlane.xlu1 %1141 }
 0x873   : > { %2400 = vrcp.f32 %v1142_v30 }
 0x874   : > { %2402 = vrcp.f32 %v1139_v32 }
 0x87d   : > { %1546 = vrot.lane.b32.xlu0 %v1544_v27, %s2484_s5  ;;  %s924_s5 = scalar_lea.vmem %s2974_s16, %s2470_s3 }
 0x880   : > { %v2401_v33 = vpop.eup %2400 }
 0x881   : > { %v2403_v35 = vpop.eup %2402  ;;  %v1146_v36 = vmul.f32 %v2401_v33, %v2391_v3 }
 0x882   : > { %v1144_v39 = vmul.f32 %v2403_v35, %v2816_v59  ;;  %v2366_v35 = vld [vmem:[%s2715_s2 + $0x8] sm:$0xff]  }
 0x884   : > { %v1147_v40 = vpack.c.bf16 %v1146_v36, %v1144_v39  ;;  %v2367_v36 = vld [vmem:[%s2715_s2] sm:$0xff]  }
 0x8ae   : > { %v1287_v38 = vpop.permute.xlu0 %1286 }
 0x8af   : > { %2232 = vmatpush3.bf16.msra.mxu0 %v1287_v38 }
 0x8b0   : > { %2243 = vmatprep.subr.bf16.mxu0 %v2481_v1 }
 0x8b2   : > { %2234 = vmatmul.mubr.msk.bf16.vlgmr.msra.gmra.mxu0 %vm1124_vm4, %v1147_v40  ;;  %v1416_v42 = vpop.permute.xlu1 %1415 }
 0x8b3   : > { %2244 = vmatpush3.bf16.msra.mxu0 %v1416_v42  ;;  %2245 = vmatprep.mubr.msk.bf16.mxu0 %vm2482_vm3, %v2481_v1 }
 0x8b4   : > { %2255 = vmatprep.subr.bf16.mxu0 %v2481_v1 }
 0x8e4   : > { %v1400_v37 = vpop.xlane.xlu0 %1399 }
 0x8e5   : > { %2404 = vrcp.f32 %v1400_v37 }
 0x8e8   : > { %v1403_v43 = vpop.xlane.xlu0 %1402 }
 0x8e9   : > { %2406 = vrcp.f32 %v1403_v43 }
 0x8ec   : > { %v1531_v44 = vpop.xlane.xlu0 %1530 }
 0x8ed   : > { %2408 = vrcp.f32 %v1531_v44 }
 0x8f0   : > { %v1534_v45 = vpop.xlane.xlu0 %1533 }
 0x8f1   : > { %2410 = vrcp.f32 %v1534_v45 }
 0x8f2   : > { %v2405_v46 = vpop.eup %2404 }
 0x8f3   : > { %v1405_v48 = vmul.f32 %v2405_v46, %v2393_v18  ;;  %v2137_v46 = vld [vmem:[%s1660_s0] ss:$0 sm:$0xff] }
 0x8f4   : > { %v1547_v53 = vpop.permute.xlu0 %1546 }
 0x8f6   : > { %v2407_v47 = vpop.eup %2406 }
 0x8f7   : > { %v1407_v49 = vmul.f32 %v2407_v47, %v2395_v20 }
 0x8f9   : > { %v1408_v50 = vpack.c.bf16 %v1407_v49, %v1405_v48 }
 0x8fa   : > { %v2409_v55 = vpop.eup %2408 }
 0x8fb   : > { %2246 = vmatmul.mubr.msk.bf16.vlgmr.msra.gmra.mxu0 %vm1124_vm4, %v1408_v50  ;;  %v1536_v57 = vmul.f32 %v2409_v55, %v2397_v22  ;;  %v2138_v50 = vld [vmem:[%s1662_s6] ss:$0 sm:$0xff] }
 0x8fc   : > { %2256 = vmatpush3.bf16.msra.mxu0 %v1547_v53  ;;  %2257 = vmatprep.mubr.msk.bf16.mxu0 %vm2482_vm3, %v2481_v1 }
 0x8fd   : > { %2269 = vmatprep.subr.bf16.mxu0 %v2481_v1 }
 0x8fe   : > { %v2411_v56 = vpop.eup %2410 }
 0x8ff   : > { %v1538_v58 = vmul.f32 %v2411_v56, %v2399_v24 }
 0x901   : > { %v1539_v59 = vpack.c.bf16 %v1538_v58, %v1536_v57  ;;  %v2368_v58 = vld [vmem:[%s928_s26 + $0x38] sm:$0xff]  }
 0x903   : > { %2258 = vmatmul.mubr.msk.bf16.vlgmr.msra.gmra.mxu0 %vm1124_vm4, %v1539_v59  ;;  %v2369_v59 = vld [vmem:[%s928_s26 + $0x30] sm:$0xff]  }
 0x904   : > { %2273 = vmatprep.mubr.msk.bf16.mxu0 %vm2482_vm3, %v2481_v1  ;;  %2270 = vmatpush3.bf16.msra.mxu0 %v2366_v35 }
 0x905   : > { %2271 = vmatprep.subr.bf16.mxu0 %v2481_v1 }
 0x908   : > { %2272 = vmatpush3.bf16.msra.mxu0 %v2367_v36 }
 0x972   : > { %v1326_v63 = vpop.f32.mrf.mxu0 }
 0x973   : > { %v1327_v7 = vadd.f32 %v1326_v63, %v2806_v31  ;;  %v2133_v31 = vld [vmem:[%s916_s25] ss:$0 sm:$0xff]  ;;  %v2372_v63 = vld [vmem:[%s928_s26 + $0x18] sm:$0xff]   ;;  %s945_s25 = scalar_lea.vmem %s2976_s18, %s2470_s3 }
 0x974   : > { %v2235_v0 = vpop.f32.mrf.mxu0 }
 0x975   : > { %v2373_v0 = vld [vmem:[%s928_s26 + $0x10] sm:$0xff]  }
 0x976   : > { %v1329_v54 = vpop.f32.mrf.mxu0 }
 0x977   : > { %v1330_v8 = vadd.f32 %v1329_v54, %v2808_v34  ;;  %v2374_v54 = vld [vmem:[%s928_s26 + $0x8] sm:$0xff]  }
 0x978   : > { %v2236_v2 = vpop.f32.mrf.mxu0 }
 0x979   : > { %v2375_v2 = vld [vmem:[%s928_s26] sm:$0xff]  }
 0x9bb   : > { %v1455_v60 = vpop.f32.mrf.mxu0 }
 0x9bc   : > { %v1462_v28 = vadd.f32 %v1455_v60, %v1327_v7  ;;  %v2139_v60 = vld [vmem:[%s924_s5] ss:$0 sm:$0xff] }
 0x9bd   : > { %v2247_v3 = vpop.f32.mrf.mxu0 }
 0x9bf   : > { %v1458_v4 = vpop.f32.mrf.mxu0 }
 0x9c0   : > { %v1463_v29 = vadd.f32 %v1458_v4, %v1330_v8 }
 0x9c1   : > { %v2248_v5 = vpop.f32.mrf.mxu0 }
 0x9c3   : > { %v1586_v6 = vpop.f32.mrf.mxu0 }
 0x9c4   : > { %v1593_v10 = vadd.f32 %v1586_v6, %v1462_v28 }
 0x9c5   : > { %v2259_v41 = vpop.f32.mrf.mxu0 }
 0x9c7   : > { %v1589_v9 = vpop.f32.mrf.mxu0 }
 0x9c8   : > { %v1594_v11 = vadd.f32 %v1589_v9, %v1463_v29 }
 0x9c9   : > { %v2260_v12 = vpop.f32.mrf.mxu0 }
 0x9ca   : > { %v1595_v13 = vpack.c.bf16 %v1594_v11, %v1593_v10 }
 0x9cc   : > { %2266 = vmatmul.mubr.msk.bf16.vlgmr.msra.gmra.mxu1 %vm951_vm2, %v1595_v13 }
 0x9cd   : > { %2293 = vmatprep.mubr.msk.bf16.mxu1 %vm2482_vm3, %v2481_v1  ;;  %2278 = vmatpush3.bf16.msra.mxu1 %v2368_v58 }
 0x9ce   : > { %2279 = vmatprep.subr.bf16.mxu1 %v2481_v1 }
 0x9d1   : > { %2280 = vmatpush3.bf16.msra.mxu1 %v2369_v59 }
 0x9d2   : > { %2281 = vmatprep.subr.bf16.mxu1 %v2481_v1 }
 0x9d5   : > { %2282 = vmatpush3.bf16.msra.mxu1 %v2370_v61 }
 0x9d6   : > { %2283 = vmatprep.subr.bf16.mxu1 %v2481_v1 }
 0x9d9   : > { %2284 = vmatpush3.bf16.msra.mxu1 %v2371_v62 }
 0x9da   : > { %2285 = vmatprep.subr.bf16.mxu1 %v2481_v1 }
 0x9dd   : > { %2286 = vmatpush3.bf16.msra.mxu1 %v2372_v63 }
 0x9de   : > { %2287 = vmatprep.subr.bf16.mxu1 %v2481_v1 }
 0x9e1   : > { %2288 = vmatpush3.bf16.msra.mxu1 %v2373_v0 }
 0x9e2   : > { %2289 = vmatprep.subr.bf16.mxu1 %v2481_v1 }
 0x9e5   : > { %2290 = vmatpush3.bf16.msra.mxu1 %v2374_v54 }
 0x9e6   : > { %2291 = vmatprep.subr.bf16.mxu1 %v2481_v1 }
 0x9e9   : > { %2292 = vmatpush3.bf16.msra.mxu1 %v2375_v2 }
 0xa8c   : > { %v1651_v14 = vpop.f32.mrf.mxu1 }
 0xa8d   : > { %v1652_v34 = vadd.f32 %v2133_v31, %v1651_v14 }
 0xa8e   : > { %v2267_v15 = vpop.f32.mrf.mxu1 }
 0xa8f   : > { %v2867_v16 = vadd.f32 %v1652_v34, %v2685_v51 }
 0xa90   : > { %v1654_v17 = vpop.f32.mrf.mxu1 }
 0xa91   : > { %v1655_v18 = vadd.f32 %v2133_v31, %v1654_v17  ;;  %v1664_v19 = vsel %vm951_vm2, %v2867_v16, 0.0  ;;  %v2145_v17 = vld [vmem:[%s945_s25] ss:$0 sm:$0xff] }
 0xa92   : > { %1665 = vadd.xlane.f32.xlu0 %v1664_v19  ;;  %v2268_v20 = vpop.f32.mrf.mxu1 }
 0xa93   : > { %v2872_v21 = vadd.f32 %v1655_v18, %v2687_v52 }
 0xa95   : > { %v1667_v22 = vsel %vm951_vm2, %v2872_v21, 0.0 }
 0xa96   : > { %1668 = vadd.xlane.f32.xlu1 %v1667_v22 }
 0xb1b   : > { %v1666_v23 = vpop.xlane.xlu0 %1665 }
 0xb1c   : > { %v1670_v24 = vmul.f32 0.03125, %v1666_v23 }
 0xb1e   : > { %v1672_v51 = vsub.f32 %v2867_v16, %v1670_v24 }
 0xb1f   : > { %v1669_v25 = vpop.xlane.xlu1 %1668 }
 0xb20   : > { %v1671_v26 = vmul.f32 0.03125, %v1669_v25  ;;  %v1674_v27 = vmul.f32 %v1672_v51, %v1672_v51 }
 0xb22   : > { %v1673_v30 = vsub.f32 %v2872_v21, %v1671_v26  ;;  %v1676_v32 = vsel %vm951_vm2, %v1674_v27, 0.0 }
 0xb23   : > { %1677 = vadd.xlane.f32.xlu0 %v1676_v32 }
 0xb24   : > { %v1675_v33 = vmul.f32 %v1673_v30, %v1673_v30 }
 0xb26   : > { %v1679_v52 = vsel %vm951_vm2, %v1675_v33, 0.0 }
 0xb27   : > { %1680 = vadd.xlane.f32.xlu0 %v1679_v52 }
 0xbac   : > { %v1678_v38 = vpop.xlane.xlu0 %1677 }
 0xbad   : > { %v1682_v39 = vmul.f32 0.03125, %v1678_v38 }
 0xbaf   : > { %v1684_v40 = vadd.f32 1e-05, %v1682_v39 }
 0xbb0   : > { %v1681_v42 = vpop.xlane.xlu0 %1680 }
 0xbb1   : > { %2412 = vrsqrt.f32 %v1684_v40  ;;  %v1683_v37 = vmul.f32 0.03125, %v1681_v42 }
 0xbb3   : > { %v1685_v43 = vadd.f32 1e-05, %v1683_v37 }
 0xbb5   : > { %2414 = vrsqrt.f32 %v1685_v43 }
 0xbbe   : > { %v2413_v44 = vpop.eup %2412 }
 0xbbf   : > { %v1688_v45 = vmul.f32 %v2413_v44, %v1672_v51 }
 0xbc1   : > { %v1696_v49 = vmul.f32 %v2137_v46, %v1688_v45 }
 0xbc2   : > { %v2415_v47 = vpop.eup %2414 }
 0xbc3   : > { %v1689_v48 = vmul.f32 %v2415_v47, %v1673_v30  ;;  %v1704_v55 = vadd.f32 %v2138_v50, %v1696_v49 }
 0xbc5   : > { %v1697_v53 = vmul.f32 %v2137_v46, %v1689_v48 }
 0xbc7   : > { %v1705_v56 = vadd.f32 %v2138_v50, %v1697_v53 }
 0xbc9   : > { %v1706_v57 = vpack.c.bf16 %v1705_v56, %v1704_v55 }
 0xbcb   : > { %2274 = vmatmul.mubr.msk.bf16.vlgmr.msra.gmra.mxu0 %vm951_vm2, %v1706_v57 }
 0xc8b   : > { %v1762_v3 = vpop.f32.mrf.mxu0 }
 0xc8c   : > { %v1763_v4 = vadd.f32 %v2139_v60, %v1762_v3 }
 0xc8d   : > { %v2275_v5 = vpop.f32.mrf.mxu0 }
 0xc8e   : > { %v2143_v6 = vmul.f32 -1.702, %v1763_v4 }
 0xc8f   : > { %v1765_v7 = vpop.f32.mrf.mxu0 }
 0xc90   : > { %v1773_v8 = vmul.f32 1.442695, %v2143_v6  ;;  %v1766_v41 = vadd.f32 %v2139_v60, %v1765_v7 }
 0xc91   : > { %v2276_v28 = vpop.f32.mrf.mxu0 }
 0xc92   : > { %2416 = vpow2.f32 %v1773_v8  ;;  %v2144_v29 = vmul.f32 -1.702, %v1766_v41 }
 0xc94   : > { %v1775_v9 = vmul.f32 1.442695, %v2144_v29 }
 0xc96   : > { %2418 = vpow2.f32 %v1775_v9 }
 0xc9f   : > { %v2417_v1 = vpop.eup %2416 }
 0xca0   : > { %v1777_v10 = vadd.f32 1.0, %v2417_v1 }
 0xca2   : > { %2420 = vrcp.f32 %v1777_v10 }
 0xca3   : > { %v2419_v11 = vpop.eup %2418 }
 0xca4   : > { %v1778_v12 = vadd.f32 1.0, %v2419_v11 }
 0xca6   : > { %2422 = vrcp.f32 %v1778_v12 }
 0xcaf   : > { %v2421_v13 = vpop.eup %2420 }
 0xcb0   : > { %v1783_v14 = vmul.f32 %v2421_v13, %v1763_v4 }
 0xcb3   : > { %v2423_v31 = vpop.eup %2422 }
 0xcb4   : > { %v1784_v34 = vmul.f32 %v2423_v31, %v1766_v41 }
 0xcb6   : > { %v1785_v15 = vpack.c.bf16 %v1784_v34, %v1783_v14 }
 0xcb8   : > { %2294 = vmatmul.mubr.bf16.vlgmr.msra.gmra.mxu1 %v1785_v15 }
 0xd78   : > { %v1874_v18 = vpop.f32.mrf.mxu1 }
 0xd79   : > { %v1875_v19 = vadd.f32 %v2145_v17, %v1874_v18 }
 0xd7a   : > { %v2295_v20 = vpop.f32.mrf.mxu1 }
 0xd7b   : > { %v1881_v22 = vadd.f32 %v1875_v19, %v2867_v16 }
 0xd7c   : > { %v1877_v23 = vpop.f32.mrf.mxu1 }
 0xd7d   : > { %1883 = vst.msk [vmem:[#allocation2] sm:$0xff] %vm951_vm2, %v1881_v22  ;;  %v1878_v24 = vadd.f32 %v2145_v17, %v1877_v23  ;;  %1888 = sbr.rel (%p2154_p5) target bundleno = 3984 (0xf90), region = 116 }
 0xd7e   : > { %v2296_v51 = vpop.f32.mrf.mxu1 }
 0xd7f   : > { %v1882_v25 = vadd.f32 %v1878_v24, %v2872_v21 }
 0xd81   : > { %1884 = vst.msk [vmem:[#allocation2 + $0x8] sm:$0xff] %vm951_vm2, %v1882_v25 }
 0xd82   : > { %v1893_v26 = vrot.slane %v1882_v25, 7  ;;  %vm1894_vm5 = vcmask 1041409   ;;  %vm1897_vm6 = vcmask 254976   ;;  %v2424_v42 = vld [vmem:[%s2979_s21 + $0x8] sm:$0xff]   ;;  %v2485_v37 = vmov 0.0   ;;  %v2425_v43 = vld [vmem:[%s2979_s21] sm:$0xff]  }
 0xd83   : > { %2297 = vmatprep.subr.bf16.mxu0 %v2485_v37  ;;  %vm2486_vm7 = vmmov 0   ;;  %v2155_v48 = vld [vmem:[%s2977_s19] ss:$0 sm:$0xff]  ;;  %vm2011_vm8 = vcmask 123904  }
 0xd84   : > { %v1895_v27 = vsel %vm1894_vm5, %v1893_v26, %v1881_v22  ;;  %2301 = vmatprep.mubr.msk.bf16.mxu0 %vm2486_vm7, %v2485_v37  ;;  %2298 = vmatpush3.bf16.msra.mxu0 %v2424_v42  ;;  %v2156_v53 = vld [vmem:[%s2978_s20] ss:$0 sm:$0xff] }
 0xd85   : > { %v1898_v30 = vsel %vm1897_vm6, %v1895_v27, 0.0  ;;  %2299 = vmatprep.subr.bf16.mxu0 %v2485_v37 }
 0xd86   : > { %1899 = vadd.xlane.f32.xlu0 %v1898_v30 }
 0xd88   : > { %2300 = vmatpush3.bf16.msra.mxu0 %v2425_v43 }
 0xe0f   : > { %v1900_v16 = vpop.xlane.xlu0 %1899 }
 0xe10   : > { %v1901_v32 = vmul.f32 0.03125, %v1900_v16 }
 0xe12   : > { %v1903_v33 = vrot.slane %v1901_v32, 1  ;;  %v1906_v52 = vsub.f32 %v1881_v22, %v1901_v32 }
 0xe14   : > { %v1907_v35 = vsub.f32 %v1882_v25, %v1903_v33  ;;  %v1908_v38 = vmul.f32 %v1906_v52, %v1906_v52 }
 0xe16   : > { %v1909_v36 = vmul.f32 %v1907_v35, %v1907_v35 }
 0xe18   : > { %v1912_v21 = vrot.slane %v1909_v36, 7 }
 0xe1a   : > { %v1913_v39 = vsel %vm1894_vm5, %v1912_v21, %v1908_v38 }
 0xe1b   : > { %v1915_v40 = vsel %vm1897_vm6, %v1913_v39, 0.0 }
 0xe1c   : > { %1916 = vadd.xlane.f32.xlu0 %v1915_v40 }
 0xea5   : > { %v1917_v44 = vpop.xlane.xlu0 %1916 }
 0xea6   : > { %v1918_v45 = vmul.f32 0.03125, %v1917_v44 }
 0xea8   : > { %v1919_v46 = vadd.f32 1e-05, %v1918_v45 }
 0xeaa   : > { %2426 = vrsqrt.f32 %v1919_v46 }
 0xeb7   : > { %v2427_v47 = vpop.eup %2426 }
 0xeb8   : > { %v1922_v49 = vrot.slane %v2427_v47, 1  ;;  %v1925_v50 = vmul.f32 %v2427_v47, %v1906_v52 }
 0xeba   : > { %v1926_v55 = vmul.f32 %v1922_v49, %v1907_v35  ;;  %v1933_v56 = vmul.f32 %v2155_v48, %v1925_v50 }
 0xebc   : > { %v1934_v57 = vmul.f32 %v2155_v48, %v1926_v55  ;;  %v1941_v58 = vadd.f32 %v2156_v53, %v1933_v56 }
 0xebe   : > { %v1942_v59 = vadd.f32 %v2156_v53, %v1934_v57  ;;  %v1943_v61 = vpack.c.bf16 %v1941_v58, %v1941_v58 }
 0xec0   : > { %v1944_v62 = vpack.c.bf16 %v1942_v59, %v1942_v59  ;;  %v1951_v0 = vunpack.c.l.b16 %v1943_v61 }
 0xec2   : > { %v1952_v63 = vunpack.c.l.b16 %v1944_v62 }
 0xec4   : > { %v1953_v54 = vrot.slane %v1952_v63, 7 }
 0xec6   : > { %v1954_v2 = vsel %vm1894_vm5, %v1953_v54, %v1951_v0 }
 0xec7   : > { %v1955_v60 = vpack.c.b16 %v1954_v2, %v1954_v2 }
 0xec9   : > { %2302 = vmatmul.mubr.msk.bf16.vlgmr.msra.gmra.mxu0 %vm951_vm2, %v1955_v60 }
 0xf89   : > { %v2005_v3 = vpop.f32.mrf.mxu0 }
 0xf8a   : > { %2012 = vst.msk [vmem:[#allocation3] sm:$0x3] %vm2011_vm8, %v2005_v3 }
 0xf8b   : > { %v2303_v4 = vpop.f32.mrf.mxu0 }
 0xf8d   : > { %v2008_v5 = vpop.f32.mrf.mxu0 }
 0xf8f   : > { %v2304_v6 = vpop.f32.mrf.mxu0 }
 0xf90 PF: > { %s3000_s25 = sadd.s32 4294967295, %s2478_s29   ;;  %s2487_s27 = smov [#allocation3]  }
 0xf91   : > { %p2934_p6 = scmp.eq.s32.totalorder %s3000_s25, 1  ;;  %s2022_s26 = sshll.u32 %s2487_s27, 4  ;;  %s2023_s26 = int_to_ptr.vmem [resolvable:$true] %s2022_s26 }
 0xf92   : > { %s2428_s0 = scalar_lea.vmem %s2023_s26, 32  ;;  %p2435_p10 = scmp.lt.s32.totalorder %s2023_s26, %s2023_s26 }
 0xf93   : > { %p2429_p7 = scmp.ne.s32.totalorder %s2023_s26, %s2428_s0  ;;  %p2436_p11 = scmp.lt.s32.totalorder %s2428_s0, %s2428_s0 }
 0xf95   : > { %p2430_p8 = pnand %p2429_p7, %p2934_p6  ;;  %p2437_p12 = por %p2436_p11, %p2435_p10 }
 0xf97   : > { %p2431_p9 = pneg %p2430_p8 }
 0xf99   : > { %p2438_p13 = pnand %p2437_p12, %p2431_p9 }
 0xf9b   : > { %2441 = shalt.err (!%p2438_p13)
}
 0xf9c   : > { %2306 = dma.vmem_to_hbm [thread:$0]  (%p2934_p6), %s2023_s26, 32, %s2980_s22, [#allocation4]  }
 0xf9d   : > { %2465 = dma.done.wait (%p2934_p6), [#allocation4], 32  }
 0xf9e   : > { %2467 = vsyncadd (%p2934_p6), [#allocation4], 4294967264 }
 0xf9f PF: > { %s33_s29 = sadd.s32 1, %s2478_s29   ;;  %s3002_s3 = smov %s2474_s28 }
 0xfa0   : > { %p30_p0 = scmp.ge.s32.totalorder %s33_s29, 4   ;;  %s3003_s28 = smov %s3005_s4 }
 0xfa2   :  { %32 = sbr.rel (!%p30_p0) target bundleno = 10 (0xa), region = 156 }
 0xfa7   :  { %2035 = vsyncpa [#allocation4], 1 }
 0xfa8   :  { %2037 = vsyncpa [#allocation4 + $0x1], 1 }

</bundles_post_ra>
